<compile_context>
chip_gen: v7x
topology: tpu7x:2x2x1
jax: 0.10.0
libtpu: 0.0.40
codegen_flags: <defaults>
</compile_context>

<pallas_src>
import jax
import jax.numpy as jnp
import numpy as np
from jax import lax
from jax.experimental import pallas as pl
from jax.experimental.pallas import tpu as pltpu


# --------------------------------------------------------------------------- #
# helpers
# --------------------------------------------------------------------------- #
def _round_up(a, b):
    return (a + b - 1) // b * b


def _pick_block_n(n, per_image_bytes, vmem_budget=8 << 20):
    """Images per grid step: VMEM-budgeted (double buffered); keep >=2 grid steps
    so 2-TC chips (v7x) get balanced work (the ~0.35us/step cost on single-TC
    v5e/v6e is negligible at these block sizes)."""
    cap = max(1, int(vmem_budget) // max(1, 2 * int(per_image_bytes)))
    bn = max(1, min(n, cap))
    if n >= 2:
        bn = min(bn, max(1, n // 2))
    while n % bn:
        bn -= 1
    return bn


def _fold_stage(dw_w, dw_b, bn_a, pw_w, pw_b, bn_b, eps):
    """Fold depthwise conv + BN + pointwise conv + BN (eval mode) into
    (scaled depthwise taps, scaled pointwise matrix, combined bias)."""
    g1, s1b, m1, v1 = bn_a
    g2, s2b, m2, v2 = bn_b
    c = dw_w.shape[0]
    k = dw_w.shape[-1]
    s1 = g1 / jnp.sqrt(v1 + eps)
    dw = dw_w[:, 0].reshape(c, k * k) * s1[:, None]                  # (C, K*K)
    bias_dw = (dw_b - m1) * s1 + s1b                                 # (C,)
    s2 = g2 / jnp.sqrt(v2 + eps)
    pw = jnp.transpose(pw_w[:, :, 0, 0], (1, 0)) * s2[None, :]       # (C, O)
    bias = (pw_b - m2) * s2 + s2b + bias_dw @ pw                     # (O,)
    return dw, pw, bias


def _tap_table(dw, wout, period):
    """(C, K*K) depthwise taps -> (K*K, wout*period) per-lane weight rows for the
    channel-interleaved layout (lane = w*period + c); padded channels get 0."""
    c, kk = dw.shape
    dwp = jnp.pad(dw, ((0, period - c), (0, 0)))                     # (period, K*K)
    tab = jnp.broadcast_to(dwp.T[:, None, :], (kk, wout, period))
    return tab.reshape(kk, wout * period)


def _blockdiag(pw, wout, in_period):
    """Block-diagonal pointwise matrix for interleaved lanes:
    (wout*in_period, wout*O) with block (w, w) = pw (rows zero-padded)."""
    ci, _ = pw.shape
    pwp = jnp.pad(pw, ((0, in_period - ci), (0, 0)))
    return jnp.kron(jnp.eye(wout, dtype=pw.dtype), pwp)


def _bias_row(bias, wout):
    return jnp.tile(bias, wout)[None, :]                             # (1, wout*O)


# --------------------------------------------------------------------------- #
# kernel
# --------------------------------------------------------------------------- #
def _make_kernel(K, S, pad, Hout, Wout, Cout, Oup1, use_double, block_n):
    WCp = Wout * Cout          # conv1 patch / skip / final lane width
    WO1 = Wout * Oup1          # conv1 output / conv2 input lane width

    def kernel(*refs):
        if use_double:
            (xph_ref, dw1_ref, m1_ref, c1_ref,
             dw2_ref, m2_ref, c2_ref, out_ref, gp_ref) = refs
        else:
            xph_ref, dw1_ref, m1_ref, c1_ref, out_ref = refs
            gp_ref = None

        if use_double:
            # Halo must be zero for conv2's "same" padding; the interior is fully
            # overwritten for every image, so zero once per grid step (tiny slab).
            gp_ref[...] = jnp.zeros(
                (Hout + 2 * pad, (Wout + 2 * pad) * Oup1), jnp.float32)

        def body(img, carry):
            # ---- conv1: depthwise KxK (stride folded into S*S input phases),
            #      BN1 scale folded into the per-lane tap weight rows.
            acc1 = None
            skip = None
            for ky in range(K):
                a, py = divmod(ky, S)
                for kx in range(K):
                    b, px = divmod(kx, S)
                    patch = xph_ref[img, py * S + px,
                                    a:a + Hout,
                                    b * Cout:b * Cout + WCp]
                    t = ky * K + kx
                    term = patch * dw1_ref[t:t + 1, :]
                    acc1 = term if acc1 is None else acc1 + term
                    # skip source patches are a subset of the conv taps:
                    # stride 1 -> center tap; stride 2 -> the 2x2 maxpool taps.
                    if pad <= ky < pad + S and pad <= kx < pad + S:
                        skip = patch if skip is None else jnp.maximum(skip, patch)

            # ---- 1x1 pointwise (BN2-scaled) as one block-diagonal MXU matmul;
            #      all stage-1 conv/BN biases folded into c1.
            g = jnp.dot(acc1, m1_ref[...],
                        preferred_element_type=jnp.float32) + c1_ref[...]

            if use_double:
                # conv2: ReLU -> depthwise KxK (stride 1, "same") -> 1x1.
                gp_ref[pad:pad + Hout, pad * Oup1:pad * Oup1 + WO1] = (
                    jnp.maximum(g, 0.0))
                acc2 = None
                for ky in range(K):
                    for kx in range(K):
                        patch2 = gp_ref[ky:ky + Hout,
                                        kx * Oup1:kx * Oup1 + WO1]
                        t = ky * K + kx
                        term = patch2 * dw2_ref[t:t + 1, :]
                        acc2 = term if acc2 is None else acc2 + term
                final = jnp.dot(acc2, m2_ref[...],
                                preferred_element_type=jnp.float32) + c2_ref[...]
            else:
                final = g

            # skip is already Cout-interleaved (input channel-padded in wrapper).
            out_ref[img] = jnp.maximum(final + skip, 0.0)
            return carry

        lax.fori_loop(0, block_n, body, 0)

    return kernel


# --------------------------------------------------------------------------- #
# wrapper
# --------------------------------------------------------------------------- #
def blaze_block_pallas(x_nchw, params, *, stride, kernel_size=5):
    K = int(kernel_size)
    S = int(stride)
    pad = (K - 1) // 2
    eps = 1e-5
    use_double = 'pw2_w' in params

    x = x_nchw.astype(jnp.float32)                      # NCHW in (PyTorch layout)
    N, Cin, H, W = x.shape
    Oup1 = params['pw1_w'].shape[0]
    Cout = params['pw2_w'].shape[0] if use_double else Oup1
    assert Cout >= Cin

    if S == 1:
        Hout, Wout = H, W
    else:
        assert S == 2 and H % 2 == 0 and W % 2 == 0
        Hout = (H + 2 * pad - K) // S + 1
        Wout = (W + 2 * pad - K) // S + 1

    # ---- fold BatchNorm (eval) + conv biases; build lane-interleaved tables ----
    dw1, pw1, c1 = _fold_stage(
        params['dw1_w'], params['dw1_b'],
        (params['bn1_g'], params['bn1_b'], params['bn1_m'], params['bn1_v']),
        params['pw1_w'], params['pw1_b'],
        (params['bn2_g'], params['bn2_b'], params['bn2_m'], params['bn2_v']), eps)
    dw1v = _tap_table(dw1, Wout, Cout)                  # (K*K, Wout*Cout)
    m1 = _blockdiag(pw1, Wout, Cout)                    # (Wout*Cout, Wout*Oup1)
    c1v = _bias_row(c1, Wout)                           # (1, Wout*Oup1)
    if use_double:
        dw2, pw2, c2 = _fold_stage(
            params['dw2_w'], params['dw2_b'],
            (params['bn3_g'], params['bn3_b'], params['bn3_m'], params['bn3_v']),
            params['pw2_w'], params['pw2_b'],
            (params['bn4_g'], params['bn4_b'], params['bn4_m'], params['bn4_v']), eps)
        dw2v = _tap_table(dw2, Wout, Oup1)              # (K*K, Wout*Oup1)
        m2 = _blockdiag(pw2, Wout, Oup1)                # (Wout*Oup1, Wout*Cout)
        c2v = _bias_row(c2, Wout)                       # (1, Wout*Cout)

    # ---- input prep: NCHW -> NHWC, channel-pad to Cout, spatial pad,
    #      stride phases, then channel-interleave the lane axis (Wph*Cout). ----
    xh = jnp.transpose(x, (0, 2, 3, 1))
    xp = jnp.pad(xh, ((0, 0), (pad, pad), (pad, pad), (0, Cout - Cin)))
    if S == 1:
        xph = xp[:, None]                               # (N, 1, Hp, Wp, Cout)
    else:
        xph = jnp.stack([xp[:, py::S, px::S]
                         for py in range(S) for px in range(S)], axis=1)
    _, P, Hph, Wph, _ = xph.shape
    xph = xph.reshape(N, P, Hph, Wph * Cout)

    # ---- grid / VMEM sizing ----
    in_img_bytes = P * _round_up(Hph, 8) * _round_up(Wph * Cout, 128) * 4
    out_img_bytes = _round_up(Hout, 8) * _round_up(Wout * Cout, 128) * 4
    block_n = _pick_block_n(N, in_img_bytes + out_img_bytes)
    grid = (N // block_n,)

    def _full_spec(shape):
        return pl.BlockSpec(tuple(shape), lambda i, _n=len(shape): (0,) * _n)

    in_specs = [pl.BlockSpec((block_n, P, Hph, Wph * Cout),
                             lambda i: (i, 0, 0, 0)),
                _full_spec(dw1v.shape), _full_spec(m1.shape), _full_spec(c1v.shape)]
    inputs = [xph, dw1v, m1, c1v]
    scratch = []
    if use_double:
        in_specs += [_full_spec(dw2v.shape), _full_spec(m2.shape),
                     _full_spec(c2v.shape)]
        inputs += [dw2v, m2, c2v]
        scratch = [pltpu.VMEM((Hout + 2 * pad, (Wout + 2 * pad) * Oup1),
                              jnp.float32)]

    kernel = _make_kernel(K, S, pad, Hout, Wout, Cout, Oup1, use_double, block_n)

    out_flat = pl.pallas_call(
        kernel,
        out_shape=jax.ShapeDtypeStruct((N, Hout, Wout * Cout), jnp.float32),
        grid_spec=pltpu.PrefetchScalarGridSpec(
            num_scalar_prefetch=0,
            grid=grid,
            in_specs=in_specs,
            out_specs=pl.BlockSpec((block_n, Hout, Wout * Cout),
                                   lambda i: (i, 0, 0)),
            scratch_shapes=scratch),
        compiler_params=pltpu.CompilerParams(
            dimension_semantics=("parallel",),
            vmem_limit_bytes=32 * 1024 * 1024),
    )(*inputs)

    # lane-dense (N, Hout, Wout*Cout) -> NCHW (free bitcast reshape + transpose)
    return out_flat.reshape(N, Hout, Wout, Cout).transpose(0, 3, 1, 2)


# ---------------- deterministic parameter init (synthetic, PyTorch shapes) ----
def init_params(key, inp, oup1, oup2=None, kernel_size=5):
    K = kernel_size
    keys = iter(jax.random.split(key, 64))

    def nxt():
        return next(keys)

    def conv_w(shape):
        return 0.1 * jax.random.normal(nxt(), shape, jnp.float32)

    def vec(c):
        return 0.1 * jax.random.normal(nxt(), (c,), jnp.float32)

    def bn(c):
        return (1.0 + 0.1 * jax.random.normal(nxt(), (c,), jnp.float32),
                0.1 * jax.random.normal(nxt(), (c,), jnp.float32),
                0.1 * jax.random.normal(nxt(), (c,), jnp.float32),
                0.5 + jnp.abs(jax.random.normal(nxt(), (c,), jnp.float32)))

    p = {}
    p['dw1_w'] = conv_w((inp, 1, K, K)); p['dw1_b'] = vec(inp)
    p['bn1_g'], p['bn1_b'], p['bn1_m'], p['bn1_v'] = bn(inp)
    p['pw1_w'] = conv_w((oup1, inp, 1, 1)); p['pw1_b'] = vec(oup1)
    p['bn2_g'], p['bn2_b'], p['bn2_m'], p['bn2_v'] = bn(oup1)
    if oup2 is not None:
        p['dw2_w'] = conv_w((oup1, 1, K, K)); p['dw2_b'] = vec(oup1)
        p['bn3_g'], p['bn3_b'], p['bn3_m'], p['bn3_v'] = bn(oup1)
        p['pw2_w'] = conv_w((oup2, oup1, 1, 1)); p['pw2_b'] = vec(oup2)
        p['bn4_g'], p['bn4_b'], p['bn4_m'], p['bn4_v'] = bn(oup2)
    return p


# ---------------- pure-JAX reference (mirrors the PyTorch forward, eval BN) ----
def reference_forward(x_nchw, p, *, stride, kernel_size=5):
    eps = 1e-5
    K = kernel_size
    pad = (K - 1) // 2
    use_double = 'pw2_w' in p
    x = jnp.transpose(x_nchw, (0, 2, 3, 1)).astype(jnp.float32)
    Cin = x.shape[-1]
    dn = ('NHWC', 'HWIO', 'NHWC')
    prec = lax.Precision.HIGHEST

    def bn(h, g, b, m, v):
        return (h - m) * (g / jnp.sqrt(v + eps)) + b

    def dwconv(h, w_oikk, bias, s):
        C = h.shape[-1]
        w = jnp.transpose(w_oikk[:, 0], (1, 2, 0))[:, :, None, :]       # (K,K,1,C)
        out = lax.conv_general_dilated(h, w, (s, s), [(pad, pad), (pad, pad)],
                                       dimension_numbers=dn,
                                       feature_group_count=C, precision=prec)
        return out + bias

    def pwconv(h, w_oikk, bias):
        w = jnp.transpose(w_oikk[:, :, 0, 0], (1, 0))[None, None]       # (1,1,Ci,Co)
        out = lax.conv_general_dilated(h, w, (1, 1), [(0, 0), (0, 0)],
                                       dimension_numbers=dn, precision=prec)
        return out + bias

    h = dwconv(x, p['dw1_w'], p['dw1_b'], stride)
    h = bn(h, p['bn1_g'], p['bn1_b'], p['bn1_m'], p['bn1_v'])
    h = pwconv(h, p['pw1_w'], p['pw1_b'])
    h = bn(h, p['bn2_g'], p['bn2_b'], p['bn2_m'], p['bn2_v'])
    if use_double:
        h = jax.nn.relu(h)
        h = dwconv(h, p['dw2_w'], p['dw2_b'], 1)
        h = bn(h, p['bn3_g'], p['bn3_b'], p['bn3_m'], p['bn3_v'])
        h = pwconv(h, p['pw2_w'], p['pw2_b'])
        h = bn(h, p['bn4_g'], p['bn4_b'], p['bn4_m'], p['bn4_v'])

    sk = x
    if stride != 1:
        sk = lax.reduce_window(sk, -jnp.inf, lax.max,
                               (1, stride, stride, 1), (1, stride, stride, 1),
                               'VALID')
    cpad = h.shape[-1] - Cin
    if cpad > 0:
        sk = jnp.pad(sk, ((0, 0), (0, 0), (0, 0), (0, cpad)))
    out = jax.nn.relu(h + sk)
    return jnp.transpose(out, (0, 3, 1, 2))


if __name__ == "__main__":
    key = jax.random.PRNGKey(0)
    kx, kp1, kp2 = jax.random.split(key, 3)
    x = jax.random.normal(kx, (2, 4, 16, 16), jnp.float32)   # NCHW, like PyTorch

    # Config A: BlazeBlock(inp=4, oup1=8), stride=1  (single block, channel pad)
    pA = init_params(kp1, 4, 8, None, kernel_size=5)
    outA = blaze_block_pallas(x, pA, stride=1, kernel_size=5)
    jax.block_until_ready(outA)
    refA = reference_forward(x, pA, stride=1, kernel_size=5)
    np.testing.assert_allclose(np.asarray(outA), np.asarray(refA),
                               rtol=1e-3, atol=1e-3)

    # Config B: BlazeBlock(inp=4, oup1=8, oup2=12, stride=2) (double block + maxpool)
    pB = init_params(kp2, 4, 8, 12, kernel_size=5)
    outB = blaze_block_pallas(x, pB, stride=2, kernel_size=5)
    jax.block_until_ready(outB)
    refB = reference_forward(x, pB, stride=2, kernel_size=5)
    np.testing.assert_allclose(np.asarray(outB), np.asarray(refB),
                               rtol=1e-3, atol=1e-3)

    print("KERNEL_OK")
</pallas_src>

<mosaic_0001>
module attributes {stable_mosaic.version = 11 : i64} {
  func.func @kernel(%arg0: i32, %arg1: memref<1x1x20x160xf32, #tpu.memory_space<vmem>>, %arg2: memref<25x128xf32, #tpu.memory_space<vmem>>, %arg3: memref<128x128xf32, #tpu.memory_space<vmem>>, %arg4: memref<1x128xf32, #tpu.memory_space<vmem>>, %arg5: memref<1x16x128xf32, #tpu.memory_space<vmem>>) attributes {dimension_semantics = [#tpu.dimension_semantics<parallel>], iteration_bounds = array<i64: 2>, scalar_prefetch = 0 : i64, scratch_operands = 0 : i64, tpu.core_type = #tpu.core_type<tc>, window_params = [{transform_indices = @transform_0, window_bounds = array<i64: 1, 1, 20, 160>}, {pipeline_mode = #tpu.pipeline_mode<synchronous>, transform_indices = @transform_1, window_bounds = array<i64: 25, 128>}, {pipeline_mode = #tpu.pipeline_mode<synchronous>, transform_indices = @transform_2, window_bounds = array<i64: 128, 128>}, {pipeline_mode = #tpu.pipeline_mode<synchronous>, transform_indices = @transform_3, window_bounds = array<i64: 1, 128>}, {transform_indices = @transform_4, window_bounds = array<i64: 1, 16, 128>}]} {
    %c0_i32 = arith.constant 0 : i32
    %0 = arith.index_cast %c0_i32 : i32 to index
    %c0 = arith.constant 0 : index
    %c0_0 = arith.constant 0 : index
    %c0_1 = arith.constant 0 : index
    %1 = vector.load %arg1[%0, %c0, %c0_0, %c0_1] : memref<1x1x20x160xf32, #tpu.memory_space<vmem>>, vector<1x1x16x128xf32>
    %2 = vector.shape_cast %1 : vector<1x1x16x128xf32> to vector<16x128xf32>
    %c0_2 = arith.constant 0 : index
    %c0_3 = arith.constant 0 : index
    %3 = vector.load %arg2[%c0_2, %c0_3] : memref<25x128xf32, #tpu.memory_space<vmem>>, vector<1x128xf32>
    %4 = vector.broadcast %3 : vector<1x128xf32> to vector<16x128xf32>
    %5 = arith.mulf %2, %4 : vector<16x128xf32>
    %6 = arith.index_cast %c0_i32 : i32 to index
    %c0_4 = arith.constant 0 : index
    %c0_5 = arith.constant 0 : index
    %c8 = arith.constant 8 : index
    %7 = vector.load %arg1[%6, %c0_4, %c0_5, %c8] : memref<1x1x20x160xf32, #tpu.memory_space<vmem>>, vector<1x1x16x128xf32>
    %8 = vector.shape_cast %7 : vector<1x1x16x128xf32> to vector<16x128xf32>
    %c1 = arith.constant 1 : index
    %c0_6 = arith.constant 0 : index
    %9 = vector.load %arg2[%c1, %c0_6] : memref<25x128xf32, #tpu.memory_space<vmem>>, vector<1x128xf32>
    %10 = vector.broadcast %9 : vector<1x128xf32> to vector<16x128xf32>
    %11 = arith.mulf %8, %10 : vector<16x128xf32>
    %12 = arith.addf %5, %11 : vector<16x128xf32>
    %13 = arith.index_cast %c0_i32 : i32 to index
    %c0_7 = arith.constant 0 : index
    %c0_8 = arith.constant 0 : index
    %c16 = arith.constant 16 : index
    %14 = vector.load %arg1[%13, %c0_7, %c0_8, %c16] : memref<1x1x20x160xf32, #tpu.memory_space<vmem>>, vector<1x1x16x128xf32>
    %15 = vector.shape_cast %14 : vector<1x1x16x128xf32> to vector<16x128xf32>
    %c2 = arith.constant 2 : index
    %c0_9 = arith.constant 0 : index
    %16 = vector.load %arg2[%c2, %c0_9] : memref<25x128xf32, #tpu.memory_space<vmem>>, vector<1x128xf32>
    %17 = vector.broadcast %16 : vector<1x128xf32> to vector<16x128xf32>
    %18 = arith.mulf %15, %17 : vector<16x128xf32>
    %19 = arith.addf %12, %18 : vector<16x128xf32>
    %20 = arith.index_cast %c0_i32 : i32 to index
    %c0_10 = arith.constant 0 : index
    %c0_11 = arith.constant 0 : index
    %c24 = arith.constant 24 : index
    %21 = vector.load %arg1[%20, %c0_10, %c0_11, %c24] : memref<1x1x20x160xf32, #tpu.memory_space<vmem>>, vector<1x1x16x128xf32>
    %22 = vector.shape_cast %21 : vector<1x1x16x128xf32> to vector<16x128xf32>
    %c3 = arith.constant 3 : index
    %c0_12 = arith.constant 0 : index
    %23 = vector.load %arg2[%c3, %c0_12] : memref<25x128xf32, #tpu.memory_space<vmem>>, vector<1x128xf32>
    %24 = vector.broadcast %23 : vector<1x128xf32> to vector<16x128xf32>
    %25 = arith.mulf %22, %24 : vector<16x128xf32>
    %26 = arith.addf %19, %25 : vector<16x128xf32>
    %27 = arith.index_cast %c0_i32 : i32 to index
    %c0_13 = arith.constant 0 : index
    %c0_14 = arith.constant 0 : index
    %c32 = arith.constant 32 : index
    %28 = vector.load %arg1[%27, %c0_13, %c0_14, %c32] : memref<1x1x20x160xf32, #tpu.memory_space<vmem>>, vector<1x1x16x128xf32>
    %29 = vector.shape_cast %28 : vector<1x1x16x128xf32> to vector<16x128xf32>
    %c4 = arith.constant 4 : index
    %c0_15 = arith.constant 0 : index
    %30 = vector.load %arg2[%c4, %c0_15] : memref<25x128xf32, #tpu.memory_space<vmem>>, vector<1x128xf32>
    %31 = vector.broadcast %30 : vector<1x128xf32> to vector<16x128xf32>
    %32 = arith.mulf %29, %31 : vector<16x128xf32>
    %33 = arith.addf %26, %32 : vector<16x128xf32>
    %34 = arith.index_cast %c0_i32 : i32 to index
    %c0_16 = arith.constant 0 : index
    %c1_17 = arith.constant 1 : index
    %c0_18 = arith.constant 0 : index
    %35 = vector.load %arg1[%34, %c0_16, %c1_17, %c0_18] : memref<1x1x20x160xf32, #tpu.memory_space<vmem>>, vector<1x1x16x128xf32>
    %36 = vector.shape_cast %35 : vector<1x1x16x128xf32> to vector<16x128xf32>
    %c5 = arith.constant 5 : index
    %c0_19 = arith.constant 0 : index
    %37 = vector.load %arg2[%c5, %c0_19] : memref<25x128xf32, #tpu.memory_space<vmem>>, vector<1x128xf32>
    %38 = vector.broadcast %37 : vector<1x128xf32> to vector<16x128xf32>
    %39 = arith.mulf %36, %38 : vector<16x128xf32>
    %40 = arith.addf %33, %39 : vector<16x128xf32>
    %41 = arith.index_cast %c0_i32 : i32 to index
    %c0_20 = arith.constant 0 : index
    %c1_21 = arith.constant 1 : index
    %c8_22 = arith.constant 8 : index
    %42 = vector.load %arg1[%41, %c0_20, %c1_21, %c8_22] : memref<1x1x20x160xf32, #tpu.memory_space<vmem>>, vector<1x1x16x128xf32>
    %43 = vector.shape_cast %42 : vector<1x1x16x128xf32> to vector<16x128xf32>
    %c6 = arith.constant 6 : index
    %c0_23 = arith.constant 0 : index
    %44 = vector.load %arg2[%c6, %c0_23] : memref<25x128xf32, #tpu.memory_space<vmem>>, vector<1x128xf32>
    %45 = vector.broadcast %44 : vector<1x128xf32> to vector<16x128xf32>
    %46 = arith.mulf %43, %45 : vector<16x128xf32>
    %47 = arith.addf %40, %46 : vector<16x128xf32>
    %48 = arith.index_cast %c0_i32 : i32 to index
    %c0_24 = arith.constant 0 : index
    %c1_25 = arith.constant 1 : index
    %c16_26 = arith.constant 16 : index
    %49 = vector.load %arg1[%48, %c0_24, %c1_25, %c16_26] : memref<1x1x20x160xf32, #tpu.memory_space<vmem>>, vector<1x1x16x128xf32>
    %50 = vector.shape_cast %49 : vector<1x1x16x128xf32> to vector<16x128xf32>
    %c7 = arith.constant 7 : index
    %c0_27 = arith.constant 0 : index
    %51 = vector.load %arg2[%c7, %c0_27] : memref<25x128xf32, #tpu.memory_space<vmem>>, vector<1x128xf32>
    %52 = vector.broadcast %51 : vector<1x128xf32> to vector<16x128xf32>
    %53 = arith.mulf %50, %52 : vector<16x128xf32>
    %54 = arith.addf %47, %53 : vector<16x128xf32>
    %55 = arith.index_cast %c0_i32 : i32 to index
    %c0_28 = arith.constant 0 : index
    %c1_29 = arith.constant 1 : index
    %c24_30 = arith.constant 24 : index
    %56 = vector.load %arg1[%55, %c0_28, %c1_29, %c24_30] : memref<1x1x20x160xf32, #tpu.memory_space<vmem>>, vector<1x1x16x128xf32>
    %57 = vector.shape_cast %56 : vector<1x1x16x128xf32> to vector<16x128xf32>
    %c8_31 = arith.constant 8 : index
    %c0_32 = arith.constant 0 : index
    %58 = vector.load %arg2[%c8_31, %c0_32] : memref<25x128xf32, #tpu.memory_space<vmem>>, vector<1x128xf32>
    %59 = vector.broadcast %58 : vector<1x128xf32> to vector<16x128xf32>
    %60 = arith.mulf %57, %59 : vector<16x128xf32>
    %61 = arith.addf %54, %60 : vector<16x128xf32>
    %62 = arith.index_cast %c0_i32 : i32 to index
    %c0_33 = arith.constant 0 : index
    %c1_34 = arith.constant 1 : index
    %c32_35 = arith.constant 32 : index
    %63 = vector.load %arg1[%62, %c0_33, %c1_34, %c32_35] : memref<1x1x20x160xf32, #tpu.memory_space<vmem>>, vector<1x1x16x128xf32>
    %64 = vector.shape_cast %63 : vector<1x1x16x128xf32> to vector<16x128xf32>
    %c9 = arith.constant 9 : index
    %c0_36 = arith.constant 0 : index
    %65 = vector.load %arg2[%c9, %c0_36] : memref<25x128xf32, #tpu.memory_space<vmem>>, vector<1x128xf32>
    %66 = vector.broadcast %65 : vector<1x128xf32> to vector<16x128xf32>
    %67 = arith.mulf %64, %66 : vector<16x128xf32>
    %68 = arith.addf %61, %67 : vector<16x128xf32>
    %69 = arith.index_cast %c0_i32 : i32 to index
    %c0_37 = arith.constant 0 : index
    %c2_38 = arith.constant 2 : index
    %c0_39 = arith.constant 0 : index
    %70 = vector.load %arg1[%69, %c0_37, %c2_38, %c0_39] : memref<1x1x20x160xf32, #tpu.memory_space<vmem>>, vector<1x1x16x128xf32>
    %71 = vector.shape_cast %70 : vector<1x1x16x128xf32> to vector<16x128xf32>
    %c10 = arith.constant 10 : index
    %c0_40 = arith.constant 0 : index
    %72 = vector.load %arg2[%c10, %c0_40] : memref<25x128xf32, #tpu.memory_space<vmem>>, vector<1x128xf32>
    %73 = vector.broadcast %72 : vector<1x128xf32> to vector<16x128xf32>
    %74 = arith.mulf %71, %73 : vector<16x128xf32>
    %75 = arith.addf %68, %74 : vector<16x128xf32>
    %76 = arith.index_cast %c0_i32 : i32 to index
    %c0_41 = arith.constant 0 : index
    %c2_42 = arith.constant 2 : index
    %c8_43 = arith.constant 8 : index
    %77 = vector.load %arg1[%76, %c0_41, %c2_42, %c8_43] : memref<1x1x20x160xf32, #tpu.memory_space<vmem>>, vector<1x1x16x128xf32>
    %78 = vector.shape_cast %77 : vector<1x1x16x128xf32> to vector<16x128xf32>
    %c11 = arith.constant 11 : index
    %c0_44 = arith.constant 0 : index
    %79 = vector.load %arg2[%c11, %c0_44] : memref<25x128xf32, #tpu.memory_space<vmem>>, vector<1x128xf32>
    %80 = vector.broadcast %79 : vector<1x128xf32> to vector<16x128xf32>
    %81 = arith.mulf %78, %80 : vector<16x128xf32>
    %82 = arith.addf %75, %81 : vector<16x128xf32>
    %83 = arith.index_cast %c0_i32 : i32 to index
    %c0_45 = arith.constant 0 : index
    %c2_46 = arith.constant 2 : index
    %c16_47 = arith.constant 16 : index
    %84 = vector.load %arg1[%83, %c0_45, %c2_46, %c16_47] : memref<1x1x20x160xf32, #tpu.memory_space<vmem>>, vector<1x1x16x128xf32>
    %85 = vector.shape_cast %84 : vector<1x1x16x128xf32> to vector<16x128xf32>
    %c12 = arith.constant 12 : index
    %c0_48 = arith.constant 0 : index
    %86 = vector.load %arg2[%c12, %c0_48] : memref<25x128xf32, #tpu.memory_space<vmem>>, vector<1x128xf32>
    %87 = vector.broadcast %86 : vector<1x128xf32> to vector<16x128xf32>
    %88 = arith.mulf %85, %87 : vector<16x128xf32>
    %89 = arith.addf %82, %88 : vector<16x128xf32>
    %90 = arith.index_cast %c0_i32 : i32 to index
    %c0_49 = arith.constant 0 : index
    %c2_50 = arith.constant 2 : index
    %c24_51 = arith.constant 24 : index
    %91 = vector.load %arg1[%90, %c0_49, %c2_50, %c24_51] : memref<1x1x20x160xf32, #tpu.memory_space<vmem>>, vector<1x1x16x128xf32>
    %92 = vector.shape_cast %91 : vector<1x1x16x128xf32> to vector<16x128xf32>
    %c13 = arith.constant 13 : index
    %c0_52 = arith.constant 0 : index
    %93 = vector.load %arg2[%c13, %c0_52] : memref<25x128xf32, #tpu.memory_space<vmem>>, vector<1x128xf32>
    %94 = vector.broadcast %93 : vector<1x128xf32> to vector<16x128xf32>
    %95 = arith.mulf %92, %94 : vector<16x128xf32>
    %96 = arith.addf %89, %95 : vector<16x128xf32>
    %97 = arith.index_cast %c0_i32 : i32 to index
    %c0_53 = arith.constant 0 : index
    %c2_54 = arith.constant 2 : index
    %c32_55 = arith.constant 32 : index
    %98 = vector.load %arg1[%97, %c0_53, %c2_54, %c32_55] : memref<1x1x20x160xf32, #tpu.memory_space<vmem>>, vector<1x1x16x128xf32>
    %99 = vector.shape_cast %98 : vector<1x1x16x128xf32> to vector<16x128xf32>
    %c14 = arith.constant 14 : index
    %c0_56 = arith.constant 0 : index
    %100 = vector.load %arg2[%c14, %c0_56] : memref<25x128xf32, #tpu.memory_space<vmem>>, vector<1x128xf32>
    %101 = vector.broadcast %100 : vector<1x128xf32> to vector<16x128xf32>
    %102 = arith.mulf %99, %101 : vector<16x128xf32>
    %103 = arith.addf %96, %102 : vector<16x128xf32>
    %104 = arith.index_cast %c0_i32 : i32 to index
    %c0_57 = arith.constant 0 : index
    %c3_58 = arith.constant 3 : index
    %c0_59 = arith.constant 0 : index
    %105 = vector.load %arg1[%104, %c0_57, %c3_58, %c0_59] : memref<1x1x20x160xf32, #tpu.memory_space<vmem>>, vector<1x1x16x128xf32>
    %106 = vector.shape_cast %105 : vector<1x1x16x128xf32> to vector<16x128xf32>
    %c15 = arith.constant 15 : index
    %c0_60 = arith.constant 0 : index
    %107 = vector.load %arg2[%c15, %c0_60] : memref<25x128xf32, #tpu.memory_space<vmem>>, vector<1x128xf32>
    %108 = vector.broadcast %107 : vector<1x128xf32> to vector<16x128xf32>
    %109 = arith.mulf %106, %108 : vector<16x128xf32>
    %110 = arith.addf %103, %109 : vector<16x128xf32>
    %111 = arith.index_cast %c0_i32 : i32 to index
    %c0_61 = arith.constant 0 : index
    %c3_62 = arith.constant 3 : index
    %c8_63 = arith.constant 8 : index
    %112 = vector.load %arg1[%111, %c0_61, %c3_62, %c8_63] : memref<1x1x20x160xf32, #tpu.memory_space<vmem>>, vector<1x1x16x128xf32>
    %113 = vector.shape_cast %112 : vector<1x1x16x128xf32> to vector<16x128xf32>
    %c16_64 = arith.constant 16 : index
    %c0_65 = arith.constant 0 : index
    %114 = vector.load %arg2[%c16_64, %c0_65] : memref<25x128xf32, #tpu.memory_space<vmem>>, vector<1x128xf32>
    %115 = vector.broadcast %114 : vector<1x128xf32> to vector<16x128xf32>
    %116 = arith.mulf %113, %115 : vector<16x128xf32>
    %117 = arith.addf %110, %116 : vector<16x128xf32>
    %118 = arith.index_cast %c0_i32 : i32 to index
    %c0_66 = arith.constant 0 : index
    %c3_67 = arith.constant 3 : index
    %c16_68 = arith.constant 16 : index
    %119 = vector.load %arg1[%118, %c0_66, %c3_67, %c16_68] : memref<1x1x20x160xf32, #tpu.memory_space<vmem>>, vector<1x1x16x128xf32>
    %120 = vector.shape_cast %119 : vector<1x1x16x128xf32> to vector<16x128xf32>
    %c17 = arith.constant 17 : index
    %c0_69 = arith.constant 0 : index
    %121 = vector.load %arg2[%c17, %c0_69] : memref<25x128xf32, #tpu.memory_space<vmem>>, vector<1x128xf32>
    %122 = vector.broadcast %121 : vector<1x128xf32> to vector<16x128xf32>
    %123 = arith.mulf %120, %122 : vector<16x128xf32>
    %124 = arith.addf %117, %123 : vector<16x128xf32>
    %125 = arith.index_cast %c0_i32 : i32 to index
    %c0_70 = arith.constant 0 : index
    %c3_71 = arith.constant 3 : index
    %c24_72 = arith.constant 24 : index
    %126 = vector.load %arg1[%125, %c0_70, %c3_71, %c24_72] : memref<1x1x20x160xf32, #tpu.memory_space<vmem>>, vector<1x1x16x128xf32>
    %127 = vector.shape_cast %126 : vector<1x1x16x128xf32> to vector<16x128xf32>
    %c18 = arith.constant 18 : index
    %c0_73 = arith.constant 0 : index
    %128 = vector.load %arg2[%c18, %c0_73] : memref<25x128xf32, #tpu.memory_space<vmem>>, vector<1x128xf32>
    %129 = vector.broadcast %128 : vector<1x128xf32> to vector<16x128xf32>
    %130 = arith.mulf %127, %129 : vector<16x128xf32>
    %131 = arith.addf %124, %130 : vector<16x128xf32>
    %132 = arith.index_cast %c0_i32 : i32 to index
    %c0_74 = arith.constant 0 : index
    %c3_75 = arith.constant 3 : index
    %c32_76 = arith.constant 32 : index
    %133 = vector.load %arg1[%132, %c0_74, %c3_75, %c32_76] : memref<1x1x20x160xf32, #tpu.memory_space<vmem>>, vector<1x1x16x128xf32>
    %134 = vector.shape_cast %133 : vector<1x1x16x128xf32> to vector<16x128xf32>
    %c19 = arith.constant 19 : index
    %c0_77 = arith.constant 0 : index
    %135 = vector.load %arg2[%c19, %c0_77] : memref<25x128xf32, #tpu.memory_space<vmem>>, vector<1x128xf32>
    %136 = vector.broadcast %135 : vector<1x128xf32> to vector<16x128xf32>
    %137 = arith.mulf %134, %136 : vector<16x128xf32>
    %138 = arith.addf %131, %137 : vector<16x128xf32>
    %139 = arith.index_cast %c0_i32 : i32 to index
    %c0_78 = arith.constant 0 : index
    %c4_79 = arith.constant 4 : index
    %c0_80 = arith.constant 0 : index
    %140 = vector.load %arg1[%139, %c0_78, %c4_79, %c0_80] : memref<1x1x20x160xf32, #tpu.memory_space<vmem>>, vector<1x1x16x128xf32>
    %141 = vector.shape_cast %140 : vector<1x1x16x128xf32> to vector<16x128xf32>
    %c20 = arith.constant 20 : index
    %c0_81 = arith.constant 0 : index
    %142 = vector.load %arg2[%c20, %c0_81] : memref<25x128xf32, #tpu.memory_space<vmem>>, vector<1x128xf32>
    %143 = vector.broadcast %142 : vector<1x128xf32> to vector<16x128xf32>
    %144 = arith.mulf %141, %143 : vector<16x128xf32>
    %145 = arith.addf %138, %144 : vector<16x128xf32>
    %146 = arith.index_cast %c0_i32 : i32 to index
    %c0_82 = arith.constant 0 : index
    %c4_83 = arith.constant 4 : index
    %c8_84 = arith.constant 8 : index
    %147 = vector.load %arg1[%146, %c0_82, %c4_83, %c8_84] : memref<1x1x20x160xf32, #tpu.memory_space<vmem>>, vector<1x1x16x128xf32>
    %148 = vector.shape_cast %147 : vector<1x1x16x128xf32> to vector<16x128xf32>
    %c21 = arith.constant 21 : index
    %c0_85 = arith.constant 0 : index
    %149 = vector.load %arg2[%c21, %c0_85] : memref<25x128xf32, #tpu.memory_space<vmem>>, vector<1x128xf32>
    %150 = vector.broadcast %149 : vector<1x128xf32> to vector<16x128xf32>
    %151 = arith.mulf %148, %150 : vector<16x128xf32>
    %152 = arith.addf %145, %151 : vector<16x128xf32>
    %153 = arith.index_cast %c0_i32 : i32 to index
    %c0_86 = arith.constant 0 : index
    %c4_87 = arith.constant 4 : index
    %c16_88 = arith.constant 16 : index
    %154 = vector.load %arg1[%153, %c0_86, %c4_87, %c16_88] : memref<1x1x20x160xf32, #tpu.memory_space<vmem>>, vector<1x1x16x128xf32>
    %155 = vector.shape_cast %154 : vector<1x1x16x128xf32> to vector<16x128xf32>
    %c22 = arith.constant 22 : index
    %c0_89 = arith.constant 0 : index
    %156 = vector.load %arg2[%c22, %c0_89] : memref<25x128xf32, #tpu.memory_space<vmem>>, vector<1x128xf32>
    %157 = vector.broadcast %156 : vector<1x128xf32> to vector<16x128xf32>
    %158 = arith.mulf %155, %157 : vector<16x128xf32>
    %159 = arith.addf %152, %158 : vector<16x128xf32>
    %160 = arith.index_cast %c0_i32 : i32 to index
    %c0_90 = arith.constant 0 : index
    %c4_91 = arith.constant 4 : index
    %c24_92 = arith.constant 24 : index
    %161 = vector.load %arg1[%160, %c0_90, %c4_91, %c24_92] : memref<1x1x20x160xf32, #tpu.memory_space<vmem>>, vector<1x1x16x128xf32>
    %162 = vector.shape_cast %161 : vector<1x1x16x128xf32> to vector<16x128xf32>
    %c23 = arith.constant 23 : index
    %c0_93 = arith.constant 0 : index
    %163 = vector.load %arg2[%c23, %c0_93] : memref<25x128xf32, #tpu.memory_space<vmem>>, vector<1x128xf32>
    %164 = vector.broadcast %163 : vector<1x128xf32> to vector<16x128xf32>
    %165 = arith.mulf %162, %164 : vector<16x128xf32>
    %166 = arith.addf %159, %165 : vector<16x128xf32>
    %167 = arith.index_cast %c0_i32 : i32 to index
    %c0_94 = arith.constant 0 : index
    %c4_95 = arith.constant 4 : index
    %c32_96 = arith.constant 32 : index
    %168 = vector.load %arg1[%167, %c0_94, %c4_95, %c32_96] : memref<1x1x20x160xf32, #tpu.memory_space<vmem>>, vector<1x1x16x128xf32>
    %169 = vector.shape_cast %168 : vector<1x1x16x128xf32> to vector<16x128xf32>
    %c24_97 = arith.constant 24 : index
    %c0_98 = arith.constant 0 : index
    %170 = vector.load %arg2[%c24_97, %c0_98] : memref<25x128xf32, #tpu.memory_space<vmem>>, vector<1x128xf32>
    %171 = vector.broadcast %170 : vector<1x128xf32> to vector<16x128xf32>
    %172 = arith.mulf %169, %171 : vector<16x128xf32>
    %173 = arith.addf %166, %172 : vector<16x128xf32>
    %c0_99 = arith.constant 0 : index
    %c0_100 = arith.constant 0 : index
    %174 = vector.load %arg3[%c0_99, %c0_100] : memref<128x128xf32, #tpu.memory_space<vmem>>, vector<128x128xf32>
    %cst = arith.constant dense<0.000000e+00> : vector<16x128xf32>
    %175 = tpu.matmul %173, %174, %cst {dimension_numbers = #tpu.dot_dimension_numbers<[1], [0], [0], [1], [0, 0, 1, 1], [], []>} : vector<16x128xf32>, vector<128x128xf32>, vector<16x128xf32> -> vector<16x128xf32>
    %c0_101 = arith.constant 0 : index
    %c0_102 = arith.constant 0 : index
    %176 = vector.load %arg4[%c0_101, %c0_102] : memref<1x128xf32, #tpu.memory_space<vmem>>, vector<1x128xf32>
    %177 = vector.broadcast %176 : vector<1x128xf32> to vector<16x128xf32>
    %178 = arith.addf %175, %177 : vector<16x128xf32>
    %179 = arith.addf %178, %85 : vector<16x128xf32>
    %cst_103 = arith.constant 0.000000e+00 : f32
    %180 = vector.broadcast %cst_103 : f32 to vector<16x128xf32>
    %181 = arith.maximumf %179, %180 : vector<16x128xf32>
    %182 = arith.index_cast %c0_i32 : i32 to index
    %c0_104 = arith.constant 0 : index
    %c0_105 = arith.constant 0 : index
    %183 = vector.load %arg5[%182, %c0_104, %c0_105] : memref<1x16x128xf32, #tpu.memory_space<vmem>>, vector<1x16x128xf32>
    %184 = vector.shape_cast %183 : vector<1x16x128xf32> to vector<16x128xf32>
    %185 = vector.shape_cast %181 : vector<16x128xf32> to vector<1x16x128xf32>
    tpu.vector_store %arg5[%182, %c0_104, %c0_105], %185 {strides = array<i32>} : memref<1x16x128xf32, #tpu.memory_space<vmem>>, vector<1x16x128xf32>,
    %c1_i32 = arith.constant 1 : i32
    return
  }
  func.func @transform_0(%arg0: i32) -> (i32, i32, i32, i32) {
    %c0_i32 = arith.constant 0 : i32
    %c0_i32_0 = arith.constant 0 : i32
    %c0_i32_1 = arith.constant 0 : i32
    %c0_i32_2 = arith.constant 0 : i32
    return %arg0, %c0_i32, %c0_i32_0, %c0_i32_1 : i32, i32, i32, i32
  }
  func.func @transform_1(%arg0: i32) -> (i32, i32) {
    %c0_i32 = arith.constant 0 : i32
    %c0_i32_0 = arith.constant 0 : i32
    %c0_i32_1 = arith.constant 0 : i32
    return %c0_i32, %c0_i32_0 : i32, i32
  }
  func.func @transform_2(%arg0: i32) -> (i32, i32) {
    %c0_i32 = arith.constant 0 : i32
    %c0_i32_0 = arith.constant 0 : i32
    %c0_i32_1 = arith.constant 0 : i32
    return %c0_i32, %c0_i32_0 : i32, i32
  }
  func.func @transform_3(%arg0: i32) -> (i32, i32) {
    %c0_i32 = arith.constant 0 : i32
    %c0_i32_0 = arith.constant 0 : i32
    %c0_i32_1 = arith.constant 0 : i32
    return %c0_i32, %c0_i32_0 : i32, i32
  }
  func.func @transform_4(%arg0: i32) -> (i32, i32, i32) {
    %c0_i32 = arith.constant 0 : i32
    %c0_i32_0 = arith.constant 0 : i32
    %c0_i32_1 = arith.constant 0 : i32
    return %arg0, %c0_i32, %c0_i32_0 : i32, i32, i32
  }
}

</mosaic_0001>

<bundles_post_ra>
// kernel: tpu_custom_call.1
= control target key start
LH: loop header
LB: loop body
LE: loop exit
PB: predicated region body
PF: predicated region fallthrough
CT: control target
= control target key end

     0   :  { %9 = vsyncpa [#allocation3], 0  ;;  %s2342_s0 = inlined_call_operand.vmem [shape: f32[2,1,20,160], index: 0, kind: input, shape index: {}]   ;;  %s2343_s1 = inlined_call_operand.vmem [shape: f32[25,128], index: 1, kind: input, shape index: {}]   ;;  %s2344_s2 = inlined_call_operand.vmem [shape: f32[128,128], index: 2, kind: input, shape index: {}]   ;;  %s2345_s3 = inlined_call_operand.vmem [shape: f32[1,128], index: 3, kind: input, shape index: {}]   ;;  %s2346_s4 = inlined_call_operand.hbm [shape: f32[2,16,128], index: 4, kind: output, shape index: {}]  }
   0x1   :  { %11 = vsyncpa [#allocation3 + $0x1], 0  ;;  %s1635_s15 = smov 0   ;;  %s1637_s16 = smov 0  }
   0x2   :  { %s1639_s17 = smov 0   ;;  %s1641_s18 = smov 0  }
   0x3 LB: > { %s1656_s19 = sadd.s32 4294967295, %s1598_s18   ;;  %s1363_s20 = sadd.s32 4294967294, %s1598_s18   ;;  %s1598_s18 = sphi %s1641_s18, %s2352_s18   ;;  %s1594_s17 = sphi %s1639_s17, %s2351_s17   ;;  %s1590_s16 = sphi %s1637_s16, %s2350_s16   ;;  %s1586_s15 = sphi %s1635_s15, %s2349_s15  }
   0x4   : > { %s1660_s21 = sadd.s32 1, %s1598_s18   ;;  %s113_s22 = sadd.s32 1, %s1594_s17 }
   0x5   : > { %s110_s23 = ssub.s32 %s1598_s18, %s1660_s21  ;;  %p123_p0 = scmp.ne.s32.totalorder %s1594_s17, %s1590_s16 }
   0x6   : > { %p111_p1 = scmp.eq.s32.totalorder %s110_s23, 0  ;;  %p124_p2 = scmp.eq.s32.totalorder %s1656_s19, 1 }
   0x7   : > { %p129_p3 = scmp.ne.s32.totalorder %s1590_s16, %s1586_s15  ;;  %p130_p4 = scmp.eq.s32.totalorder %s1363_s20, 1 }
   0x8   : > { %s1671_s24 = scalar_select %p111_p1, %s1594_s17, %s113_s22  }
   0x9   : > { %p1673_p5 = por %p124_p2, %p123_p0  ;;  %p1677_p6 = por %p130_p4, %p129_p3 }
   0xa   : > { %p1366_p7 = scmp.ge.s32.totalorder %s1598_s18, 1  ;;  %p165_p8 = scmp.lt.s32.totalorder %s1598_s18, 3 }
   0xc   : > { %p166_p9 = pnand %p1366_p7, %p165_p8 }
   0xd   : > { %v1370_v0 = vld [vmem:[%s2343_s1 + $0x1] ss:$0 sm:$0xff] (!%p166_p9)  ;;  %s1600_s29 = smov (!%p166_p9), 8   ;;  %v1372_v1 = vld [vmem:[%s2343_s1 + $0x3] ss:$0 sm:$0xff] (!%p166_p9)  ;;  %s1601_s8 = smov (!%p166_p9), 24  }
   0xe   : > { %169 = sbr.rel (%p166_p9) target bundleno = 639 (0x27f), region = 36  ;;  %213 = vrot.lane.b32.xlu0 (!%p166_p9), %v1370_v0, %s1600_s29  ;;  %v1371_v2 = vld [vmem:[%s2343_s1 + $0x2] ss:$0 sm:$0xff] (!%p166_p9)  ;;  %277 = vrot.lane.b32.xlu1 (!%p166_p9), %v1372_v1, %s1601_s8  ;;  %v1373_v3 = vld [vmem:[%s2343_s1 + $0x4] ss:$0 sm:$0xff] (!%p166_p9)  ;;  %s1602_s11 = smov (!%p166_p9), 16  }
   0xf   : > { %s1603_s12 = smov (!%p166_p9), 32   ;;  %v1375_v4 = vld [vmem:[%s2343_s1 + $0x6] ss:$0 sm:$0xff] (!%p166_p9)  ;;  %v1376_v5 = vld [vmem:[%s2343_s1 + $0x7] ss:$0 sm:$0xff] (!%p166_p9)  ;;  %p191_p10 = scmp.lt.s32.totalorder (!%p166_p9), %s1656_s19, 1 }
  0x10   : > { %v1377_v6 = vld [vmem:[%s2343_s1 + $0x8] ss:$0 sm:$0xff] (!%p166_p9)  ;;  %v1378_v7 = vld [vmem:[%s2343_s1 + $0x9] ss:$0 sm:$0xff] (!%p166_p9)  ;;  %v1380_v8 = vld [vmem:[%s2343_s1 + $0xb] ss:$0 sm:$0xff] (!%p166_p9) }
  0x11   : > { %v1381_v9 = vld [vmem:[%s2343_s1 + $0xc] ss:$0 sm:$0xff] (!%p166_p9)  ;;  %v1382_v10 = vld [vmem:[%s2343_s1 + $0xd] ss:$0 sm:$0xff] (!%p166_p9)  ;;  %v1383_v11 = vld [vmem:[%s2343_s1 + $0xe] ss:$0 sm:$0xff] (!%p166_p9) }
  0x12   : > { %245 = vrot.lane.b32.xlu0 (!%p166_p9), %v1371_v2, %s1602_s11  ;;  %309 = vrot.lane.b32.xlu1 (!%p166_p9), %v1373_v3, %s1603_s12  ;;  %v1385_v12 = vld [vmem:[%s2343_s1 + $0x10] ss:$0 sm:$0xff] (!%p166_p9)  ;;  %v1386_v13 = vld [vmem:[%s2343_s1 + $0x11] ss:$0 sm:$0xff] (!%p166_p9)  ;;  %s1607_s9 = smov (!%p166_p9), 96   ;;  %vm348_vm0 = vcmask (!%p166_p9), 1046528  }
  0x13   : > { %v1387_v14 = vld [vmem:[%s2343_s1 + $0x12] ss:$0 sm:$0xff] (!%p166_p9)  ;;  %v1388_v15 = vld [vmem:[%s2343_s1 + $0x13] ss:$0 sm:$0xff] (!%p166_p9)  ;;  %v1390_v16 = vld [vmem:[%s2343_s1 + $0x15] ss:$0 sm:$0xff] (!%p166_p9) }
  0x14   : > { %v1391_v17 = vld [vmem:[%s2343_s1 + $0x16] ss:$0 sm:$0xff] (!%p166_p9)  ;;  %v1392_v18 = vld [vmem:[%s2343_s1 + $0x17] ss:$0 sm:$0xff] (!%p166_p9)  ;;  %v1393_v19 = vld [vmem:[%s2343_s1 + $0x18] ss:$0 sm:$0xff] (!%p166_p9) }
  0x15   : > { %s192_s28 = scalar_select %p191_p10, %s1656_s19, 1  ;;  %vm553_vm1 = vcmask 1045504   ;;  %vm758_vm2 = vcmask 1044480   ;;  %vm963_vm3 = vcmask 1043456   ;;  %vm232_vm4 = vcmask 982016  }
  0x16   : > { %366 = vrot.lane.b32.xlu0 %v1375_v4, %s1600_s29  ;;  %411 = vrot.lane.b32.xlu1 %v1376_v5, %s1602_s11  ;;  %vm264_vm5 = vcmask 916480   ;;  %vm296_vm6 = vcmask 850944   ;;  %vm328_vm7 = vcmask 785408  }
  0x17   : > { %s1486_s30 = smul.u32 48, %s192_s28 }
  0x19   : > { %s1768_s7 = scalar_lea.vmem %s2342_s0, %s1486_s30 }
  0x1a   : > { %456 = vrot.lane.b32.xlu0 %v1377_v6, %s1601_s8  ;;  %501 = vrot.lane.b32.xlu1 %v1378_v7, %s1603_s12  ;;  %v205_v20 = vld [vmem:[%s1768_s7 + $0x8] sm:$0xff]  ;;  %v1772_v21 = vld [vmem:[%s1768_s7] sm:$0xff] }
  0x1b   : > { %v1776_v25 = vld [vmem:[%s1768_s7 + $0x18] sm:$0xff]  ;;  %v1779_v26 = vld [vmem:[%s1768_s7 + $0x10] sm:$0xff]  ;;  %v1800_v41 = vld [vmem:[%s1768_s7 + $0x8] sm:$0xfe] }
  0x1c   : > { %v1803_v42 = vld [vmem:[%s1768_s7] sm:$0xfe]  ;;  %v1815_v49 = vld [vmem:[%s1768_s7 + $0x28] sm:$0x1]  ;;  %v1818_v50 = vld [vmem:[%s1768_s7 + $0x20] sm:$0x1] }
  0x1e   : > { %571 = vrot.lane.b32.xlu0 %v1380_v8, %s1600_s29  ;;  %616 = vrot.lane.b32.xlu1 %v1381_v9, %s1602_s11 }
  0x22   : > { %661 = vrot.lane.b32.xlu0 %v1382_v10, %s1601_s8  ;;  %706 = vrot.lane.b32.xlu1 %v1383_v11, %s1603_s12 }
  0x26   : > { %776 = vrot.lane.b32.xlu0 %v1385_v12, %s1600_s29  ;;  %821 = vrot.lane.b32.xlu1 %v1386_v13, %s1602_s11 }
  0x2a   : > { %866 = vrot.lane.b32.xlu0 %v1387_v14, %s1601_s8  ;;  %911 = vrot.lane.b32.xlu1 %v1388_v15, %s1603_s12 }
  0x2e   : > { %981 = vrot.lane.b32.xlu0 %v1390_v16, %s1600_s29  ;;  %1026 = vrot.lane.b32.xlu1 %v1391_v17, %s1602_s11  ;;  %s1605_s11 = smov 112  }
  0x32   : > { %1071 = vrot.lane.b32.xlu0 %v1392_v18, %s1601_s8  ;;  %1116 = vrot.lane.b32.xlu1 %v1393_v19, %s1603_s12  ;;  %s1604_s8 = smov 120   ;;  %s1606_s12 = smov 104  }
  0x80   : > { %v214_v22 = vpop.permute.xlu0 %213  ;;  %v278_v32 = vpop.permute.xlu1 %277 }
  0x81   : > { %v217_v23 = vmul.f32 %v214_v22, %v205_v20  ;;  %v216_v24 = vmul.f32 %v214_v22, %v1772_v21  ;;  %v219_v28 = vmul.f32 %v214_v22, %v1776_v25  ;;  %v218_v29 = vmul.f32 %v214_v22, %v1779_v26 }
  0x82   : > { %v281_v35 = vmul.f32 %v278_v32, %v205_v20  ;;  %v280_v36 = vmul.f32 %v278_v32, %v1772_v21  ;;  %v283_v38 = vmul.f32 %v278_v32, %v1776_v25  ;;  %v282_v39 = vmul.f32 %v278_v32, %v1779_v26 }
  0x83   : > { %226 = vrot.lane.b32.xlu1 %v217_v23, %s1604_s8  ;;  %224 = vrot.lane.b32.xlu0 %v216_v24, %s1604_s8 }
  0x84   : > { %v246_v27 = vpop.permute.xlu0 %245  ;;  %v310_v37 = vpop.permute.xlu1 %309 }
  0x85   : > { %v249_v30 = vmul.f32 %v246_v27, %v205_v20  ;;  %v248_v31 = vmul.f32 %v246_v27, %v1772_v21  ;;  %v251_v33 = vmul.f32 %v246_v27, %v1776_v25  ;;  %v250_v34 = vmul.f32 %v246_v27, %v1779_v26 }
  0x86   : > { %v313_v43 = vmul.f32 %v310_v37, %v205_v20  ;;  %v312_v44 = vmul.f32 %v310_v37, %v1772_v21  ;;  %v315_v56 = vmul.f32 %v310_v37, %v1776_v25  ;;  %v314_v57 = vmul.f32 %v310_v37, %v1779_v26 }
  0x87   : > { %230 = vrot.lane.b32.xlu1 %v219_v28, %s1604_s8  ;;  %228 = vrot.lane.b32.xlu0 %v218_v29, %s1604_s8 }
  0x88   : > { %v367_v40 = vpop.permute.xlu0 %366  ;;  %v412_v55 = vpop.permute.xlu1 %411 }
  0x89   : > { %v370_v45 = vmul.f32 %v367_v40, %v1800_v41  ;;  %v372_v46 = vmul.f32 %v367_v40, %v1776_v25  ;;  %v369_v47 = vmul.f32 %v367_v40, %v1803_v42  ;;  %v371_v48 = vmul.f32 %v367_v40, %v1779_v26 }
  0x8a   : > { %v374_v58 = vmul.f32 %v367_v40, %v1815_v49  ;;  %v373_v59 = vmul.f32 %v367_v40, %v1818_v50  ;;  %v415_v60 = vmul.f32 %v412_v55, %v1800_v41  ;;  %v417_v61 = vmul.f32 %v412_v55, %v1776_v25 }
  0x8b   : > { %258 = vrot.lane.b32.xlu1 %v249_v30, %s1605_s11  ;;  %256 = vrot.lane.b32.xlu0 %v248_v31, %s1605_s11  ;;  %v384_v51 = vrot.slane %v370_v45, 1  ;;  %v385_v52 = vrot.slane %v372_v46, 1  ;;  %v381_v53 = vrot.slane %v369_v47, 1  ;;  %v382_v54 = vrot.slane %v371_v48, 1  ;;  %v1866_v48 = vld [vmem:[%s1768_s7] sm:$0xfc] }
  0x8c   : > { %v414_v0 = vmul.f32 %v412_v55, %v1803_v42  ;;  %v416_v1 = vmul.f32 %v412_v55, %v1779_v26  ;;  %v389_v2 = vrot.slane %v374_v58, 1  ;;  %v387_v3 = vrot.slane %v373_v59, 1  ;;  %v457_v8 = vpop.permute.xlu0 %456  ;;  %v502_v28 = vpop.permute.xlu1 %501 }
  0x8d   : > { %v386_v62 = vsel %vm348_vm0, %v384_v51, %v385_v52  ;;  %v383_v63 = vsel %vm348_vm0, %v381_v53, %v382_v54  ;;  %v429_v4 = vrot.slane %v415_v60, 1  ;;  %v430_v5 = vrot.slane %v417_v61, 1 }
  0x8e   : > { %v426_v6 = vrot.slane %v414_v0, 1  ;;  %v427_v7 = vrot.slane %v416_v1, 1  ;;  %v390_v9 = vsel %vm348_vm0, %v385_v52, %v389_v2  ;;  %v388_v10 = vsel %vm348_vm0, %v382_v54, %v387_v3  ;;  %v1883_v0 = vld [vmem:[%s1768_s7 + $0x28] sm:$0x3]  ;;  %v1886_v1 = vld [vmem:[%s1768_s7 + $0x20] sm:$0x3] }
  0x8f   : > { %262 = vrot.lane.b32.xlu1 %v251_v33, %s1605_s11  ;;  %260 = vrot.lane.b32.xlu0 %v250_v34, %s1605_s11  ;;  %v419_v11 = vmul.f32 %v412_v55, %v1815_v49  ;;  %v418_v12 = vmul.f32 %v412_v55, %v1818_v50  ;;  %v460_v13 = vmul.f32 %v457_v8, %v1800_v41 }
  0x90   : > { %v462_v14 = vmul.f32 %v457_v8, %v1776_v25  ;;  %v431_v15 = vsel %vm348_vm0, %v429_v4, %v430_v5  ;;  %v428_v16 = vsel %vm348_vm0, %v426_v6, %v427_v7  ;;  %v459_v17 = vmul.f32 %v457_v8, %v1803_v42  ;;  %v572_v47 = vpop.permute.xlu0 %571  ;;  %v617_v4 = vpop.permute.xlu1 %616 }
  0x91   : > { %v461_v18 = vmul.f32 %v457_v8, %v1779_v26  ;;  %v434_v19 = vrot.slane %v419_v11, 1  ;;  %v432_v20 = vrot.slane %v418_v12, 1  ;;  %v474_v22 = vrot.slane %v460_v13, 1 }
  0x92   : > { %v475_v23 = vrot.slane %v462_v14, 1  ;;  %v471_v24 = vrot.slane %v459_v17, 1  ;;  %v464_v31 = vmul.f32 %v457_v8, %v1815_v49  ;;  %v463_v32 = vmul.f32 %v457_v8, %v1818_v50 }
  0x93   : > { %290 = vrot.lane.b32.xlu1 %v281_v35, %s1606_s12  ;;  %288 = vrot.lane.b32.xlu0 %v280_v36, %s1606_s12  ;;  %v472_v27 = vrot.slane %v461_v18, 1  ;;  %v435_v29 = vsel %vm348_vm0, %v430_v5, %v434_v19  ;;  %v433_v30 = vsel %vm348_vm0, %v427_v7, %v432_v20  ;;  %v505_v34 = vmul.f32 %v502_v28, %v1800_v41  ;;  %v1863_v41 = vld [vmem:[%s1768_s7 + $0x8] sm:$0xfc] }
  0x94   : > { %v476_v33 = vsel %vm348_vm0, %v474_v22, %v475_v23  ;;  %v507_v36 = vmul.f32 %v502_v28, %v1776_v25  ;;  %v504_v37 = vmul.f32 %v502_v28, %v1803_v42  ;;  %v477_v40 = vrot.slane %v463_v32, 1 }
  0x95   : > { %v473_v35 = vsel %vm348_vm0, %v471_v24, %v472_v27  ;;  %v509_v53 = vmul.f32 %v502_v28, %v1815_v49  ;;  %v508_v54 = vmul.f32 %v502_v28, %v1818_v50  ;;  %v575_v55 = vmul.f32 %v572_v47, %v1863_v41 }
  0x96   : > { %v516_v45 = vrot.slane %v504_v37, 1  ;;  %v478_v52 = vsel %vm348_vm0, %v472_v27, %v477_v40  ;;  %v574_v59 = vmul.f32 %v572_v47, %v1866_v48  ;;  %v576_v49 = vmul.f32 %v572_v47, %v1779_v26 }
  0x97   : > { %294 = vrot.lane.b32.xlu1 %v283_v38, %s1606_s12  ;;  %292 = vrot.lane.b32.xlu0 %v282_v39, %s1606_s12  ;;  %v506_v38 = vmul.f32 %v502_v28, %v1779_v26  ;;  %v479_v39 = vrot.slane %v464_v31, 1  ;;  %v524_v60 = vrot.slane %v509_v53, 1  ;;  %v522_v61 = vrot.slane %v508_v54, 1  ;;  %v662_v28 = vpop.permute.xlu0 %661 }
  0x98   : > { %v586_v2 = vrot.slane %v574_v59, 2  ;;  %v587_v3 = vrot.slane %v576_v49, 2  ;;  %v579_v7 = vmul.f32 %v572_v47, %v1883_v0  ;;  %v578_v8 = vmul.f32 %v572_v47, %v1886_v1 }
  0x99   : > { %v517_v46 = vrot.slane %v506_v38, 1  ;;  %v480_v51 = vsel %vm348_vm0, %v475_v23, %v479_v39  ;;  %v620_v11 = vmul.f32 %v617_v4, %v1863_v41  ;;  %v622_v13 = vmul.f32 %v617_v4, %v1776_v25 }
  0x9a   : > { %v588_v12 = vsel %vm553_vm1, %v586_v2, %v587_v3  ;;  %v619_v14 = vmul.f32 %v617_v4, %v1866_v48  ;;  %v594_v17 = vrot.slane %v579_v7, 2  ;;  %v592_v18 = vrot.slane %v578_v8, 2 }
  0x9b   : > { %322 = vrot.lane.b32.xlu1 %v313_v43, %s1607_s9  ;;  %320 = vrot.lane.b32.xlu0 %v312_v44, %s1607_s9  ;;  %v519_v43 = vrot.slane %v505_v34, 1  ;;  %v520_v44 = vrot.slane %v507_v36, 1  ;;  %v518_v58 = vsel %vm348_vm0, %v516_v45, %v517_v46  ;;  %v523_v6 = vsel %vm348_vm0, %v517_v46, %v522_v61 }
  0x9c   : > { %v634_v22 = vrot.slane %v620_v11, 2  ;;  %v635_v23 = vrot.slane %v622_v13, 2  ;;  %v631_v24 = vrot.slane %v619_v14, 2  ;;  %v593_v32 = vsel %vm553_vm1, %v587_v3, %v592_v18  ;;  %v1946_v3 = vld [vmem:[%s1768_s7 + $0x20] sm:$0x7] }
  0x9d   : > { %v525_v5 = vsel %vm348_vm0, %v520_v44, %v524_v60  ;;  %v665_v34 = vmul.f32 %v662_v28, %v1863_v41  ;;  %v664_v39 = vmul.f32 %v662_v28, %v1866_v48  ;;  %v666_v40 = vmul.f32 %v662_v28, %v1779_v26  ;;  %v1958_v18 = vld [vmem:[%s1768_s7 + $0x8] sm:$0xf8] }
  0x9e   : > { %v669_v49 = vmul.f32 %v662_v28, %v1883_v0  ;;  %v668_v60 = vmul.f32 %v662_v28, %v1886_v1 }
  0x9f   : > { %326 = vrot.lane.b32.xlu1 %v315_v56, %s1607_s9  ;;  %324 = vrot.lane.b32.xlu0 %v314_v57, %s1607_s9  ;;  %v577_v56 = vmul.f32 %v572_v47, %v1776_v25  ;;  %v521_v57 = vsel %vm348_vm0, %v519_v43, %v520_v44  ;;  %v679_v46 = vrot.slane %v665_v34, 2  ;;  %v676_v53 = vrot.slane %v664_v39, 2 }
  0xa0   : > { %v677_v54 = vrot.slane %v666_v40, 2  ;;  %v682_v11 = vrot.slane %v668_v60, 2 }
  0xa3   : > { %393 = vrot.lane.b32.xlu1 %v386_v62, %s1604_s8  ;;  %391 = vrot.lane.b32.xlu0 %v383_v63, %s1604_s8  ;;  %v589_v62 = vrot.slane %v575_v55, 2  ;;  %v590_v63 = vrot.slane %v577_v56, 2  ;;  %v707_v55 = vpop.permute.xlu1 %706 }
  0xa4   : > { %v712_v2 = vmul.f32 %v707_v55, %v1776_v25  ;;  %v711_v7 = vmul.f32 %v707_v55, %v1779_v26 }
  0xa6   : > { %v725_v14 = vrot.slane %v712_v2, 2 }
  0xa7   : > { %397 = vrot.lane.b32.xlu1 %v390_v9, %s1604_s8  ;;  %395 = vrot.lane.b32.xlu0 %v388_v10, %s1604_s8  ;;  %v1374_v9 = vld [vmem:[%s2343_s1 + $0x5] ss:$0 sm:$0xff]  ;;  %v591_v10 = vsel %vm553_vm1, %v589_v62, %v590_v63  ;;  %v822_v39 = vpop.permute.xlu1 %821 }
  0xa8   : > { %v343_v19 = vmul.f32 %v1374_v9, %v1779_v26  ;;  %v344_v31 = vmul.f32 %v1374_v9, %v1818_v50  ;;  %v636_v50 = vsel %vm553_vm1, %v634_v22, %v635_v23  ;;  %v683_v22 = vsel %vm553_vm1, %v677_v54, %v682_v11 }
  0xaa   : > { %v352_v37 = vrot.slane %v344_v31, 1 }
  0xab   : > { %438 = vrot.lane.b32.xlu1 %v431_v15, %s1605_s11  ;;  %436 = vrot.lane.b32.xlu0 %v428_v16, %s1605_s11  ;;  %v621_v15 = vmul.f32 %v617_v4, %v1779_v26  ;;  %v342_v16 = vmul.f32 %v1374_v9, %v1803_v42  ;;  %v595_v42 = vsel %vm553_vm1, %v590_v63, %v594_v17  ;;  %v777_v17 = vpop.permute.xlu0 %776 }
  0xac   : > { %v710_v63 = vmul.f32 %v707_v55, %v1863_v41 }
  0xad   : > { %v349_v20 = vrot.slane %v342_v16, 1  ;;  %v632_v27 = vrot.slane %v621_v15, 2  ;;  %v722_v16 = vrot.slane %v711_v7, 2 }
  0xae   : > { %v724_v13 = vrot.slane %v710_v63, 2 }
  0xaf   : > { %442 = vrot.lane.b32.xlu1 %v435_v29, %s1605_s11  ;;  %440 = vrot.lane.b32.xlu0 %v433_v30, %s1605_s11  ;;  %v624_v29 = vmul.f32 %v617_v4, %v1883_v0  ;;  %v350_v30 = vrot.slane %v343_v19, 1  ;;  %v633_v38 = vsel %vm553_vm1, %v631_v24, %v632_v27  ;;  %v713_v24 = vmul.f32 %v707_v55, %v1886_v1 }
  0xb1   : > { %v1917_v36 = vsel %vm348_vm0, %v349_v20, %v350_v30  ;;  %v639_v43 = vrot.slane %v624_v29, 2  ;;  %v1924_v44 = vsel %vm348_vm0, %v350_v30, %v352_v37  ;;  %v726_v29 = vsel %vm553_vm1, %v724_v13, %v725_v14  ;;  %v1978_v37 = vld [vmem:[%s1768_s7 + $0x28] sm:$0x7] }
  0xb2   : > { %v829_v2 = vmul.f32 %v822_v39, %v1978_v37 }
  0xb3   : > { %483 = vrot.lane.b32.xlu1 %v476_v33, %s1606_s12  ;;  %481 = vrot.lane.b32.xlu0 %v473_v35, %s1606_s12  ;;  %v623_v33 = vmul.f32 %v617_v4, %v1886_v1  ;;  %v667_v35 = vmul.f32 %v662_v28, %v1776_v25  ;;  %v782_v28 = vmul.f32 %v777_v17, %v1776_v25 }
  0xb5   : > { %v637_v45 = vrot.slane %v623_v33, 2  ;;  %v680_v47 = vrot.slane %v667_v35, 2  ;;  %v727_v33 = vrot.slane %v713_v24, 2  ;;  %v795_v35 = vrot.slane %v782_v28, 3 }
  0xb7   : > { %487 = vrot.lane.b32.xlu1 %v480_v51, %s1606_s12  ;;  %485 = vrot.lane.b32.xlu0 %v478_v52, %s1606_s12  ;;  %v1929_v51 = vld [vmem:[%s1768_s7] sm:$0xf8]  ;;  %v1384_v52 = vld [vmem:[%s2343_s1 + $0xf] ss:$0 sm:$0xff]  ;;  %v638_v59 = vsel %vm553_vm1, %v632_v27, %v637_v45  ;;  %v681_v62 = vsel %vm553_vm1, %v679_v46, %v680_v47  ;;  %v780_v27 = vmul.f32 %v777_v17, %v1958_v18 }
  0xb8   : > { %v752_v56 = vmul.f32 %v1384_v52, %v1929_v51  ;;  %v754_v8 = vmul.f32 %v1384_v52, %v1946_v3  ;;  %v779_v31 = vmul.f32 %v777_v17, %v1929_v51  ;;  %v784_v45 = vmul.f32 %v777_v17, %v1978_v37 }
  0xb9   : > { %v794_v34 = vrot.slane %v780_v27, 3  ;;  %v783_v46 = vmul.f32 %v777_v17, %v1946_v3 }
  0xba   : > { %v759_v61 = vrot.slane %v752_v56, 3  ;;  %v826_v56 = vmul.f32 %v822_v39, %v1779_v26 }
  0xbb   : > { %528 = vrot.lane.b32.xlu1 %v521_v57, %s1607_s9  ;;  %526 = vrot.lane.b32.xlu0 %v518_v58, %s1607_s9  ;;  %v640_v57 = vsel %vm553_vm1, %v635_v23, %v639_v43  ;;  %v753_v58 = vmul.f32 %v1384_v52, %v1779_v26  ;;  %v714_v23 = vmul.f32 %v707_v55, %v1883_v0 }
  0xbc   : > { %v728_v43 = vsel %vm553_vm1, %v722_v16, %v727_v33  ;;  %v825_v52 = vmul.f32 %v822_v39, %v1958_v18  ;;  %v837_v63 = vrot.slane %v826_v56, 3 }
  0xbd   : > { %v760_v4 = vrot.slane %v753_v58, 3  ;;  %v797_v58 = vrot.slane %v783_v46, 3 }
  0xbe   : > { %v839_v60 = vrot.slane %v825_v52, 3 }
  0xbf   : > { %532 = vrot.lane.b32.xlu1 %v525_v5, %s1607_s9  ;;  %530 = vrot.lane.b32.xlu0 %v523_v6, %s1607_s9  ;;  %v678_v5 = vsel %vm553_vm1, %v676_v53, %v677_v54  ;;  %v709_v6 = vmul.f32 %v707_v55, %v1866_v48  ;;  %v1953_v9 = vsel %vm758_vm2, %v759_v61, %v760_v4 }
  0xc0   : > { %v827_v54 = vmul.f32 %v822_v39, %v1776_v25  ;;  %v824_v55 = vmul.f32 %v822_v39, %v1929_v51 }
  0xc1   : > { %v721_v15 = vrot.slane %v709_v6, 2 }
  0xc2   : > { %v840_v61 = vrot.slane %v827_v54, 3 }
  0xc3   : > { %598 = vrot.lane.b32.xlu1 %v591_v10, %s1604_s8  ;;  %596 = vrot.lane.b32.xlu0 %v588_v12, %s1604_s8  ;;  %v684_v10 = vrot.slane %v669_v49, 2  ;;  %v762_v12 = vrot.slane %v754_v8, 3  ;;  %v723_v30 = vsel %vm553_vm1, %v721_v15, %v722_v16  ;;  %v867_v49 = vpop.permute.xlu0 %866 }
  0xc4   : > { %v841_v7 = vsel %vm758_vm2, %v839_v60, %v840_v61  ;;  %v872_v11 = vmul.f32 %v867_v49, %v1776_v25  ;;  %v869_v16 = vmul.f32 %v867_v49, %v1929_v51  ;;  %v873_v33 = vmul.f32 %v867_v49, %v1946_v3 }
  0xc5   : > { %v1961_v19 = vsel %vm758_vm2, %v760_v4, %v762_v12  ;;  %v685_v20 = vsel %vm553_vm1, %v680_v47, %v684_v10  ;;  %v796_v47 = vsel %vm758_vm2, %v794_v34, %v795_v35  ;;  %v828_v4 = vmul.f32 %v822_v39, %v1946_v3  ;;  %v2033_v39 = vld [vmem:[%s1768_s7 + $0x20] sm:$0xf] }
  0xc6   : > { %v870_v10 = vmul.f32 %v867_v49, %v1958_v18  ;;  %v885_v24 = vrot.slane %v872_v11, 3  ;;  %v2075_v11 = vld [vmem:[%s1768_s7 + $0x8] sm:$0xf0] }
  0xc7   : > { %602 = vrot.lane.b32.xlu1 %v595_v42, %s1604_s8  ;;  %600 = vrot.lane.b32.xlu0 %v593_v32, %s1604_s8  ;;  %v781_v42 = vmul.f32 %v777_v17, %v1779_v26  ;;  %v729_v32 = vrot.slane %v714_v23, 2  ;;  %v2008_v13 = vpop.permute.xlu0 %981  ;;  %v842_v15 = vrot.slane %v828_v4, 3  ;;  %v871_v17 = vmul.f32 %v867_v49, %v1779_v26 }
  0xc8   : > { %v884_v23 = vrot.slane %v870_v10, 3 }
  0xc9   : > { %v730_v40 = vsel %vm553_vm1, %v725_v14, %v729_v32  ;;  %v844_v14 = vrot.slane %v829_v2, 3  ;;  %v882_v32 = vrot.slane %v871_v17, 3 }
  0xcb   : > { %643 = vrot.lane.b32.xlu1 %v636_v50, %s1605_s11  ;;  %641 = vrot.lane.b32.xlu0 %v633_v38, %s1605_s11  ;;  %v791_v50 = vrot.slane %v779_v31, 3  ;;  %v792_v38 = vrot.slane %v781_v42, 3  ;;  %v881_v31 = vrot.slane %v869_v16, 3  ;;  %v874_v42 = vmul.f32 %v867_v49, %v1978_v37 }
  0xcd   : > { %v793_v53 = vsel %vm758_vm2, %v791_v50, %v792_v38  ;;  %v798_v6 = vsel %vm758_vm2, %v792_v38, %v797_v58  ;;  %v2030_v38 = vpop.permute.xlu0 %1071  ;;  %v889_v56 = vrot.slane %v874_v42, 3  ;;  %v1155_v58 = vld [vmem:[%s2344_s2] sm:$0xff]  ;;  %v986_v42 = vmul.f32 %v2008_v13, %v1779_v26 }
  0xcf   : > { %647 = vrot.lane.b32.xlu1 %v640_v57, %s1605_s11  ;;  %645 = vrot.lane.b32.xlu0 %v638_v59, %s1605_s11  ;;  %v799_v57 = vrot.slane %v784_v45, 3  ;;  %v1994_v59 = vpop.permute.xlu1 %911  ;;  %v890_v10 = vsel %vm758_vm2, %v885_v24, %v889_v56  ;;  %v988_v56 = vmul.f32 %v2008_v13, %v2033_v39 }
  0xd0   : > { %v917_v52 = vmul.f32 %v1994_v59, %v1776_v25  ;;  %v2051_v54 = vmul.f32 %v1994_v59, %v1779_v26 }
  0xd3   : > { %688 = vrot.lane.b32.xlu1 %v681_v62, %s1606_s12  ;;  %686 = vrot.lane.b32.xlu0 %v678_v5, %s1606_s12  ;;  %v836_v62 = vrot.slane %v824_v55, 3  ;;  %v800_v5 = vsel %vm758_vm2, %v795_v35, %v799_v57  ;;  %v2006_v12 = vpop.permute.xlu1 %1026  ;;  %v883_v55 = vsel %vm758_vm2, %v881_v31, %v882_v32  ;;  %v887_v57 = vrot.slane %v873_v33, 3  ;;  %v1159_v33 = vld [vmem:[%s2344_s2 + $0x20] sm:$0xff] }
  0xd5   : > { %v838_v8 = vsel %vm758_vm2, %v836_v62, %v837_v63 }
  0xd7   : > { %692 = vrot.lane.b32.xlu1 %v685_v20, %s1606_s12  ;;  %690 = vrot.lane.b32.xlu0 %v683_v22, %s1606_s12  ;;  %v2015_v20 = vld [vmem:[%s1768_s7] sm:$0xf0]  ;;  %v1389_v22 = vld [vmem:[%s2343_s1 + $0x14] ss:$0 sm:$0xff]  ;;  %v2028_v50 = vpop.permute.xlu1 %1116 }
  0xd8   : > { %v957_v27 = vmul.f32 %v1389_v22, %v2015_v20  ;;  %v958_v28 = vmul.f32 %v1389_v22, %v1779_v26  ;;  %v959_v46 = vmul.f32 %v1389_v22, %v2033_v39  ;;  %v984_v31 = vmul.f32 %v2008_v13, %v2015_v20 }
  0xda   : > { %v964_v34 = vrot.slane %v957_v27, 4  ;;  %v965_v35 = vrot.slane %v958_v28, 4  ;;  %v967_v49 = vrot.slane %v959_v46, 4  ;;  %v985_v27 = vmul.f32 %v2008_v13, %v2075_v11 }
  0xdb   : > { %733 = vrot.lane.b32.xlu1 %v726_v29, %s1607_s9  ;;  %731 = vrot.lane.b32.xlu0 %v723_v30, %s1607_s9  ;;  %v845_v29 = vsel %vm758_vm2, %v840_v61, %v844_v14  ;;  %v843_v30 = vsel %vm758_vm2, %v837_v63, %v842_v15  ;;  %v919_v61 = vmul.f32 %v1994_v59, %v1978_v37  ;;  %v1157_v14 = vld [vmem:[%s2344_s2 + $0x10] sm:$0xff]  ;;  %v1158_v15 = vld [vmem:[%s2344_s2 + $0x18] sm:$0xff] }
  0xdc   : > { %v2040_v45 = vsel %vm963_vm3, %v964_v34, %v965_v35  ;;  %v2066_v62 = vsel %vm963_vm3, %v965_v35, %v967_v49  ;;  %v918_v37 = vmul.f32 %v1994_v59, %v1946_v3  ;;  %v1458_v17 = vpack.c.bf16 %v1158_v15, %v1157_v14  ;;  %v1160_v34 = vld [vmem:[%s2344_s2 + $0x28] sm:$0xff]  ;;  %v1163_v15 = vld [vmem:[%s2344_s2 + $0x40] sm:$0xff] }
  0xdd   : > { %v934_v22 = vrot.slane %v919_v61, 3  ;;  %v987_v28 = vmul.f32 %v2008_v13, %v1776_v25  ;;  %v1462_v35 = vpack.c.bf16 %v1160_v34, %v1159_v33  ;;  %v997_v49 = vrot.slane %v986_v42, 4  ;;  %v1165_v34 = vld [vmem:[%s2344_s2 + $0x50] sm:$0xff] }
  0xde   : > { %v1030_v61 = vmul.f32 %v2006_v12, %v2075_v11  ;;  %v2136_v14 = vmul.f32 %v2006_v12, %v1779_v26  ;;  %v1033_v33 = vmul.f32 %v2006_v12, %v2033_v39 }
  0xdf   : > { %737 = vrot.lane.b32.xlu1 %v730_v40, %s1607_s9  ;;  %735 = vrot.lane.b32.xlu0 %v728_v43, %s1607_s9  ;;  %v886_v40 = vsel %vm758_vm2, %v884_v23, %v885_v24  ;;  %v1369_v43 = vld [vmem:[%s2343_s1] ss:$0 sm:$0xff] }
  0xe3   : > { %803 = vrot.lane.b32.xlu1 %v796_v47, %s1604_s8  ;;  %801 = vrot.lane.b32.xlu0 %v793_v53, %s1604_s8  ;;  %v915_v47 = vmul.f32 %v1994_v59, %v1958_v18  ;;  %v914_v53 = vmul.f32 %v1994_v59, %v1929_v51  ;;  %v1156_v18 = vld [vmem:[%s2344_s2 + $0x8] sm:$0xff]  ;;  %v203_v51 = vmul.f32 %v1369_v43, %v1772_v21 }
  0xe4   : > { %v1454_v60 = vpack.c.bf16 %v1156_v18, %v1155_v58  ;;  %v888_v21 = vsel %vm758_vm2, %v882_v32, %v887_v57  ;;  %v2097_v32 = vld [vmem:[%s1768_s7 + $0x28] sm:$0xf]  ;;  %v996_v18 = vrot.slane %v984_v31, 4  ;;  %v1042_v31 = vrot.slane %v2136_v14, 4 }
  0xe5   : > { %v929_v4 = vrot.slane %v915_v47, 3  ;;  %v1034_v42 = vmul.f32 %v2006_v12, %v2097_v32 }
  0xe6   : > { %1455 = vmatprep.subr.bf16.mxu0 %v1454_v60 }
  0xe7   : > { %807 = vrot.lane.b32.xlu1 %v800_v5, %s1604_s8  ;;  %805 = vrot.lane.b32.xlu0 %v798_v6, %s1604_s8  ;;  %v930_v5 = vrot.slane %v917_v52, 3  ;;  %v926_v6 = vrot.slane %v914_v53, 3  ;;  %v999_v53 = vrot.slane %v985_v27, 4 }
  0xe8   : > { %1457 = vmatpush3.bf16.msra.mxu0 %v1454_v60 }
  0xe9   : > { %v931_v23 = vsel %vm758_vm2, %v929_v4, %v930_v5  ;;  %1459 = vmatprep.subr.bf16.mxu0 %v1458_v17  ;;  %v935_v46 = vsel %vm758_vm2, %v930_v5, %v934_v22 }
  0xeb   : > { %848 = vrot.lane.b32.xlu1 %v841_v7, %s1605_s11  ;;  %846 = vrot.lane.b32.xlu0 %v838_v8, %s1605_s11  ;;  %v927_v7 = vrot.slane %v2051_v54, 3  ;;  %v1000_v54 = vrot.slane %v987_v28, 4 }
  0xec   : > { %1461 = vmatpush3.bf16.msra.mxu0 %v1458_v17 }
  0xed   : > { %v928_v24 = vsel %vm758_vm2, %v926_v6, %v927_v7  ;;  %1463 = vmatprep.subr.bf16.mxu0 %v1462_v35 }
  0xef   : > { %852 = vrot.lane.b32.xlu1 %v845_v29, %s1605_s11  ;;  %850 = vrot.lane.b32.xlu0 %v843_v30, %s1605_s11  ;;  %v932_v30 = vrot.slane %v918_v37, 3  ;;  %v998_v37 = vsel %vm963_vm3, %v996_v18, %v997_v49  ;;  %v1049_v18 = vrot.slane %v1034_v42, 4 }
  0xf0   : > { %1465 = vmatpush3.bf16.msra.mxu0 %v1462_v35  ;;  %v1166_v35 = vld [vmem:[%s2344_s2 + $0x58] sm:$0xff] }
  0xf1   : > { %v933_v58 = vsel %vm758_vm2, %v927_v7, %v932_v30  ;;  %v1002_v7 = vrot.slane %v988_v56, 4  ;;  %v1076_v56 = vmul.f32 %v2030_v38, %v1779_v26 }
  0xf3   : > { %893 = vrot.lane.b32.xlu1 %v886_v40, %s1606_s12  ;;  %891 = vrot.lane.b32.xlu0 %v883_v55, %s1606_s12  ;;  %v204_v40 = vmul.f32 %v1369_v43, %v1779_v26  ;;  %v989_v55 = vmul.f32 %v2008_v13, %v2097_v32  ;;  %v1161_v43 = vld [vmem:[%s2344_s2 + $0x30] sm:$0xff]  ;;  %v1003_v27 = vsel %vm963_vm3, %v997_v49, %v1002_v7  ;;  %v1047_v49 = vrot.slane %v1033_v33, 4 }
  0xf4   : > { %v1079_v7 = vmul.f32 %v2030_v38, %v2097_v32 }
  0xf5   : > { %v227_v63 = vpop.permute.xlu1 %226  ;;  %v225_v2 = vpop.permute.xlu0 %224  ;;  %v1004_v6 = vrot.slane %v989_v55, 4  ;;  %v1074_v55 = vmul.f32 %v2030_v38, %v2015_v20 }
  0xf6   : > { %v233_v8 = vsel %vm232_vm4, %v225_v2, %v227_v63  ;;  %v2127_v63 = vmul.f32 %v2006_v12, %v1776_v25 }
  0xf7   : > { %v237_v16 = vadd.f32 %v233_v8, %v203_v51  ;;  %897 = vrot.lane.b32.xlu1 %v890_v10, %s1606_s12  ;;  %895 = vrot.lane.b32.xlu0 %v888_v21, %s1606_s12  ;;  %v1162_v51 = vld [vmem:[%s2344_s2 + $0x38] sm:$0xff]  ;;  %v1029_v8 = vmul.f32 %v2006_v12, %v2015_v20  ;;  %v1001_v21 = vsel %vm963_vm3, %v999_v53, %v1000_v54 }
  0xf8   : > { %v1466_v13 = vpack.c.bf16 %v1162_v51, %v1161_v43  ;;  %v1045_v28 = vrot.slane %v2127_v63, 4  ;;  %v1077_v12 = vmul.f32 %v2030_v38, %v1776_v25  ;;  %v1167_v43 = vld [vmem:[%s2344_s2 + $0x60] sm:$0xff]  ;;  %v1168_v51 = vld [vmem:[%s2344_s2 + $0x68] sm:$0xff] }
  0xf9   : > { %v231_v3 = vpop.permute.xlu1 %230  ;;  %v229_v59 = vpop.permute.xlu0 %228 }
  0xfa   : > { %v234_v29 = vsel %vm232_vm4, %v229_v59, %v231_v3  ;;  %1467 = vmatprep.subr.bf16.mxu0 %v1466_v13  ;;  %v1044_v3 = vrot.slane %v1030_v61, 4  ;;  %v1090_v63 = vrot.slane %v1077_v12, 4  ;;  %v1050_v14 = vsel %vm963_vm3, %v1045_v28, %v1049_v18 }
  0xfb   : > { %938 = vrot.lane.b32.xlu1 %v931_v23, %s1607_s9  ;;  %936 = vrot.lane.b32.xlu0 %v928_v24, %s1607_s9  ;;  %v238_v2 = vadd.f32 %v234_v29, %v204_v40  ;;  %v1005_v24 = vsel %vm963_vm3, %v1000_v54, %v1004_v6  ;;  %v1041_v29 = vrot.slane %v1029_v8, 4  ;;  %v1087_v6 = vrot.slane %v1076_v56, 4 }
  0xfc   : > { %1469 = vmatpush3.bf16.msra.mxu0 %v1466_v13  ;;  %v1046_v54 = vsel %vm963_vm3, %v1044_v3, %v1045_v28  ;;  %v1478_v13 = vpack.c.bf16 %v1168_v51, %v1167_v43  ;;  %v1078_v8 = vmul.f32 %v2030_v38, %v2033_v39  ;;  %v1119_v28 = vmul.f32 %v2028_v50, %v2015_v20 }
  0xfd   : > { %v259_v47 = vpop.permute.xlu1 %258  ;;  %v257_v52 = vpop.permute.xlu0 %256 }
  0xfe   : > { %v265_v57 = vsel %vm264_vm5, %v257_v52, %v259_v47  ;;  %v1075_v47 = vmul.f32 %v2030_v38, %v2075_v11  ;;  %v1120_v38 = vmul.f32 %v2028_v50, %v2075_v11  ;;  %v1121_v11 = vmul.f32 %v2028_v50, %v1779_v26 }
  0xff   : > { %v269_v60 = vadd.f32 %v265_v57, %v237_v16  ;;  %942 = vrot.lane.b32.xlu1 %v935_v46, %s1607_s9  ;;  %940 = vrot.lane.b32.xlu0 %v933_v58, %s1607_s9  ;;  %v1164_v16 = vld [vmem:[%s2344_s2 + $0x48] sm:$0xff]  ;;  %v1474_v46 = vpack.c.bf16 %v1166_v35, %v1165_v34  ;;  %v1043_v58 = vsel %vm963_vm3, %v1041_v29, %v1042_v31 }
 0x100   : > { %v1470_v22 = vpack.c.bf16 %v1164_v16, %v1163_v15  ;;  %v1089_v61 = vrot.slane %v1075_v47, 4  ;;  %v1048_v15 = vsel %vm963_vm3, %v1042_v31, %v1047_v49  ;;  %v1131_v47 = vrot.slane %v1119_v28, 4 }
 0x101   : > { %v263_v4 = vpop.permute.xlu1 %262  ;;  %v261_v5 = vpop.permute.xlu0 %260 }
 0x102   : > { %v266_v10 = vsel %vm264_vm5, %v261_v5, %v263_v4  ;;  %1471 = vmatprep.subr.bf16.mxu0 %v1470_v22  ;;  %v1086_v5 = vrot.slane %v1074_v55, 4 }
 0x103   : > { %v270_v17 = vadd.f32 %v266_v10, %v238_v2  ;;  %1008 = vrot.lane.b32.xlu1 %v1001_v21, %s1604_s8  ;;  %1006 = vrot.lane.b32.xlu0 %v998_v37, %s1604_s8  ;;  %v1169_v10 = vld [vmem:[%s2344_s2 + $0x70] sm:$0xff]  ;;  %v1170_v21 = vld [vmem:[%s2344_s2 + $0x78] sm:$0xff] }
 0x104   : > { %1473 = vmatpush3.bf16.msra.mxu0 %v1470_v22  ;;  %v1482_v16 = vpack.c.bf16 %v1170_v21, %v1169_v10  ;;  %v1122_v22 = vmul.f32 %v2028_v50, %v1776_v25  ;;  %v1088_v31 = vsel %vm963_vm3, %v1086_v5, %v1087_v6 }
 0x105   : > { %v291_v59 = vpop.permute.xlu1 %290  ;;  %v289_v23 = vpop.permute.xlu0 %288  ;;  %1475 = vmatprep.subr.bf16.mxu0 %v1474_v46 }
 0x106   : > { %v297_v30 = vsel %vm296_vm6, %v289_v23, %v291_v59  ;;  %v1135_v33 = vrot.slane %v1122_v22, 4 }
 0x107   : > { %v301_v40 = vadd.f32 %v297_v30, %v269_v60  ;;  %1012 = vrot.lane.b32.xlu1 %v1005_v24, %s1604_s8  ;;  %1010 = vrot.lane.b32.xlu0 %v1003_v27, %s1604_s8  ;;  %v1094_v24 = vrot.slane %v1079_v7, 4  ;;  %v1092_v27 = vrot.slane %v1078_v8, 4  ;;  %v1091_v30 = vsel %vm963_vm3, %v1089_v61, %v1090_v63  ;;  %s1400_s8 = sshll.u32 %s1656_s19, 8  ;;  %s1608_s19 = smov [#allocation2]  }
 0x108   : > { %1477 = vmatpush3.bf16.msra.mxu0 %v1474_v46  ;;  %s2298_s13 = scalar_lea.hbm %s2346_s4, %s1400_s8  ;;  %s1540_s22 = sshll.u32 %s1608_s19, 4  ;;  %s1541_s22 = int_to_ptr.vmem [resolvable:$false] %s1540_s22 }
 0x109   : > { %v295_v52 = vpop.permute.xlu1 %294  ;;  %v293_v53 = vpop.permute.xlu0 %292  ;;  %1479 = vmatprep.subr.bf16.mxu0 %v1478_v13  ;;  %v1095_v20 = vsel %vm963_vm3, %v1090_v63, %v1094_v24  ;;  %s1542_s23 = scalar_lea.vmem %s1541_s22, 512 }
 0x10a   : > { %v298_v57 = vsel %vm296_vm6, %v293_v53, %v295_v52  ;;  %v1132_v52 = vrot.slane %v1121_v11, 4  ;;  %v1124_v53 = vmul.f32 %v2028_v50, %v2097_v32  ;;  %v1259_v32 = vrot.slane %v1866_v48, 2 }
 0x10b   : > { %v302_v60 = vadd.f32 %v298_v57, %v270_v17  ;;  %1053 = vrot.lane.b32.xlu1 %v1046_v54, %s1605_s11  ;;  %1051 = vrot.lane.b32.xlu0 %v1043_v58, %s1605_s11  ;;  %v1123_v54 = vmul.f32 %v2028_v50, %v2033_v39  ;;  %v1262_v50 = vrot.slane %v1863_v41, 2  ;;  %v1263_v39 = vrot.slane %v1776_v25, 2 }
 0x10c   : > { %1481 = vmatpush3.bf16.msra.mxu0 %v1478_v13  ;;  %v1133_v18 = vsel %vm963_vm3, %v1131_v47, %v1132_v52  ;;  %v1139_v49 = vrot.slane %v1124_v53, 4 }
 0x10d   : > { %v323_v2 = vpop.permute.xlu1 %322  ;;  %v321_v4 = vpop.permute.xlu0 %320  ;;  %1483 = vmatprep.subr.bf16.mxu0 %v1482_v16  ;;  %v1137_v43 = vrot.slane %v1123_v54, 4  ;;  %v1264_v41 = vsel %vm553_vm1, %v1262_v50, %v1263_v39 }
 0x10e   : > { %v329_v37 = vsel %vm328_vm7, %v321_v4, %v323_v2  ;;  %v1140_v2 = vsel %vm963_vm3, %v1135_v33, %v1139_v49 }
 0x10f   : > { %v333_v17 = vadd.f32 %v329_v37, %v301_v40  ;;  %1057 = vrot.lane.b32.xlu1 %v1050_v14, %s1605_s11  ;;  %1055 = vrot.lane.b32.xlu0 %v1048_v15, %s1605_s11  ;;  %v1093_v40 = vsel %vm963_vm3, %v1087_v6, %v1092_v27  ;;  %v1138_v4 = vsel %vm963_vm3, %v1132_v52, %v1137_v43  ;;  %v1267_v6 = vrot.slane %v1883_v0, 2 }
 0x110   : > { %1485 = vmatpush3.bf16.msra.mxu0 %v1482_v16 }
 0x111   : > { %v327_v3 = vpop.permute.xlu1 %326  ;;  %v325_v59 = vpop.permute.xlu0 %324  ;;  %v356_v23 = vadd.f32 %v1917_v36, %v333_v17  ;;  %v1134_v36 = vrot.slane %v1120_v38, 4  ;;  %v1268_v37 = vsel %vm553_vm1, %v1263_v39, %v1267_v6 }
 0x112   : > { %v330_v29 = vsel %vm328_vm7, %v325_v59, %v327_v3 }
 0x113   : > { %v334_v42 = vadd.f32 %v330_v29, %v302_v60  ;;  %1098 = vrot.lane.b32.xlu1 %v1091_v30, %s1606_s12  ;;  %1096 = vrot.lane.b32.xlu0 %v1088_v31, %s1606_s12  ;;  %v1136_v58 = vsel %vm963_vm3, %v1134_v36, %v1135_v33  ;;  %v1260_v60 = vrot.slane %v1779_v26, 2  ;;  %v1265_v26 = vrot.slane %v1886_v1, 2  ;;  %v1379_v33 = vld [vmem:[%s2343_s1 + $0xa] ss:$0 sm:$0xff] }
 0x114   : > { %v549_v54 = vmul.f32 %v1379_v33, %v1886_v1 }
 0x115   : > { %v394_v34 = vpop.permute.xlu1 %393  ;;  %v392_v35 = vpop.permute.xlu0 %391  ;;  %v357_v46 = vadd.f32 %v1924_v44, %v334_v42  ;;  %v1261_v25 = vsel %vm553_vm1, %v1259_v32, %v1260_v60  ;;  %v1266_v14 = vsel %vm553_vm1, %v1260_v60, %v1265_v26 }
 0x116   : > { %v399_v12 = vsel %vm232_vm4, %v392_v35, %v394_v34 }
 0x117   : > { %v403_v55 = vadd.f32 %v399_v12, %v356_v23  ;;  %1102 = vrot.lane.b32.xlu1 %v1095_v20, %s1606_s12  ;;  %1100 = vrot.lane.b32.xlu0 %v1093_v40, %s1606_s12  ;;  %v547_v20 = vmul.f32 %v1379_v33, %v1866_v48  ;;  %v1535_v40 = vld [vmem:[%s1768_s7 + $0x10] sm:$0xff]  ;;  %s188_s7 = sand.u32 1, %s1590_s16  }
 0x118   : > { %s2300_s14 = scalar_lea.sflag [#allocation3], %s188_s7 }
 0x119   : > { %v398_v56 = vpop.permute.xlu1 %397  ;;  %v396_v57 = vpop.permute.xlu0 %395  ;;  %v554_v52 = vrot.slane %v547_v20, 2 }
 0x11a   : > { %v400_v44 = vsel %vm232_vm4, %v396_v57, %v398_v56 }
 0x11b   : > { %v404_v51 = vadd.f32 %v400_v44, %v357_v46  ;;  %1143 = vrot.lane.b32.xlu1 %v1136_v58, %s1607_s9  ;;  %1141 = vrot.lane.b32.xlu0 %v1133_v18, %s1607_s9  ;;  %v548_v46 = vmul.f32 %v1535_v40, %v1379_v33  ;;  %v557_v58 = vrot.slane %v549_v54, 2 }
 0x11d   : > { %v439_v13 = vpop.permute.xlu1 %438  ;;  %v437_v61 = vpop.permute.xlu0 %436  ;;  %v555_v53 = vrot.slane %v548_v46, 2 }
 0x11e   : > { %v444_v63 = vsel %vm264_vm5, %v437_v61, %v439_v13 }
 0x11f   : > { %v448_v5 = vadd.f32 %v444_v63, %v403_v55  ;;  %1147 = vrot.lane.b32.xlu1 %v1140_v2, %s1607_s9  ;;  %1145 = vrot.lane.b32.xlu0 %v1138_v4, %s1607_s9  ;;  %v556_v57 = vsel %vm553_vm1, %v554_v52, %v555_v53  ;;  %v558_v48 = vsel %vm553_vm1, %v555_v53, %v557_v58  ;;  %s1367_s9 = sshll.u32 %s188_s7, 4 }
 0x120   : > { %s190_s30 = scalar_lea.vmem [#allocation2], %s1367_s9 }
 0x121   : > { %v443_v7 = vpop.permute.xlu1 %442  ;;  %v441_v8 = vpop.permute.xlu0 %440  ;;  %s1301_s5 = sshll.u32 %s190_s30, 4  ;;  %s2293_s5 = int_to_ptr.vmem [resolvable:$true] %s1301_s5 }
 0x122   : > { %v445_v10 = vsel %vm264_vm5, %v441_v8, %v443_v7  ;;  %s1536_s20 = scalar_lea.vmem %s2293_s5, 256  ;;  %p1543_p0 = scmp.lt.s32.totalorder %s2293_s5, %s1541_s22 }
 0x123   : > { %v449_v21 = vadd.f32 %v445_v10, %v404_v51  ;;  %1271 = vrot.lane.b32.xlu1 %v1264_v41, %s1605_s11  ;;  %1269 = vrot.lane.b32.xlu0 %v1261_v25, %s1605_s11  ;;  %p1537_p11 = scmp.ne.s32.totalorder %s2293_s5, %s1536_s20  ;;  %p1544_p1 = scmp.lt.s32.totalorder %s1542_s23, %s1536_s20 }
 0x125   : > { %v484_v15 = vpop.permute.xlu1 %483  ;;  %v482_v16 = vpop.permute.xlu0 %481  ;;  %p1538_p12 = pnand %p1537_p11, %p1673_p5  ;;  %p1545_p2 = por %p1544_p1, %p1543_p0 }
 0x126   : > { %v489_v17 = vsel %vm296_vm6, %v482_v16, %v484_v15 }
 0x127   : > { %v493_v0 = vadd.f32 %v489_v17, %v448_v5  ;;  %1275 = vrot.lane.b32.xlu1 %v1268_v37, %s1605_s11  ;;  %1273 = vrot.lane.b32.xlu0 %v1266_v14, %s1605_s11  ;;  %p1539_p13 = pneg %p1538_p12 }
 0x129   : > { %v488_v38 = vpop.permute.xlu1 %487  ;;  %v486_v22 = vpop.permute.xlu0 %485  ;;  %p1546_p3 = pnand %p1545_p2, %p1539_p13 }
 0x12a   : > { %v490_v3 = vsel %vm296_vm6, %v486_v22, %v488_v38 }
 0x12b   : > { %v494_v59 = vadd.f32 %v490_v3, %v449_v21 }
 0x12d   : > { %v529_v23 = vpop.permute.xlu1 %528  ;;  %v527_v24 = vpop.permute.xlu0 %526 }
 0x12e   : > { %v534_v27 = vsel %vm328_vm7, %v527_v24, %v529_v23 }
 0x12f   : > { %v538_v28 = vadd.f32 %v534_v27, %v493_v0 }
 0x131   : > { %v533_v29 = vpop.permute.xlu1 %532  ;;  %v531_v30 = vpop.permute.xlu0 %530  ;;  %v561_v43 = vadd.f32 %v556_v57, %v538_v28 }
 0x132   : > { %v535_v31 = vsel %vm328_vm7, %v531_v30, %v533_v29 }
 0x133   : > { %v539_v11 = vadd.f32 %v535_v31, %v494_v59 }
 0x135   : > { %v599_v42 = vpop.permute.xlu1 %598  ;;  %v597_v36 = vpop.permute.xlu0 %596  ;;  %v562_v13 = vadd.f32 %v558_v48, %v539_v11 }
 0x136   : > { %v604_v49 = vsel %vm232_vm4, %v597_v36, %v599_v42 }
 0x137   : > { %v608_v50 = vadd.f32 %v604_v49, %v561_v43 }
 0x139   : > { %v603_v34 = vpop.permute.xlu1 %602  ;;  %v601_v35 = vpop.permute.xlu0 %600 }
 0x13a   : > { %v605_v60 = vsel %vm232_vm4, %v601_v35, %v603_v34 }
 0x13b   : > { %v609_v2 = vadd.f32 %v605_v60, %v562_v13 }
 0x13d   : > { %v644_v47 = vpop.permute.xlu1 %643  ;;  %v642_v12 = vpop.permute.xlu0 %641 }
 0x13e   : > { %v649_v51 = vsel %vm264_vm5, %v642_v12, %v644_v47 }
 0x13f   : > { %v653_v61 = vadd.f32 %v649_v51, %v608_v50 }
 0x141   : > { %v648_v55 = vpop.permute.xlu1 %647  ;;  %v646_v56 = vpop.permute.xlu0 %645 }
 0x142   : > { %v650_v63 = vsel %vm264_vm5, %v646_v56, %v648_v55 }
 0x143   : > { %v654_v26 = vadd.f32 %v650_v63, %v609_v2 }
 0x145   : > { %v689_v44 = vpop.permute.xlu1 %688  ;;  %v687_v18 = vpop.permute.xlu0 %686 }
 0x146   : > { %v694_v1 = vsel %vm296_vm6, %v687_v18, %v689_v44 }
 0x147   : > { %v698_v4 = vadd.f32 %v694_v1, %v653_v61 }
 0x149   : > { %v693_v39 = vpop.permute.xlu1 %692  ;;  %v691_v32 = vpop.permute.xlu0 %690 }
 0x14a   : > { %v695_v25 = vsel %vm296_vm6, %v691_v32, %v693_v39 }
 0x14b   : > { %v699_v8 = vadd.f32 %v695_v25, %v654_v26 }
 0x14d   : > { %v734_v5 = vpop.permute.xlu1 %733  ;;  %v732_v41 = vpop.permute.xlu0 %731 }
 0x14e   : > { %v739_v6 = vsel %vm328_vm7, %v732_v41, %v734_v5 }
 0x14f   : > { %v743_v7 = vadd.f32 %v739_v6, %v698_v4 }
 0x151   : > { %v738_v10 = vpop.permute.xlu1 %737  ;;  %v736_v21 = vpop.permute.xlu0 %735  ;;  %v766_v37 = vadd.f32 %v1953_v9, %v743_v7 }
 0x152   : > { %v740_v14 = vsel %vm328_vm7, %v736_v21, %v738_v10 }
 0x153   : > { %v744_v15 = vadd.f32 %v740_v14, %v699_v8 }
 0x155   : > { %v804_v16 = vpop.permute.xlu1 %803  ;;  %v802_v17 = vpop.permute.xlu0 %801  ;;  %v767_v0 = vadd.f32 %v1961_v19, %v744_v15 }
 0x156   : > { %v809_v29 = vsel %vm232_vm4, %v802_v17, %v804_v16 }
 0x157   : > { %v813_v9 = vadd.f32 %v809_v29, %v766_v37 }
 0x159   : > { %v808_v38 = vpop.permute.xlu1 %807  ;;  %v806_v22 = vpop.permute.xlu0 %805 }
 0x15a   : > { %v810_v42 = vsel %vm232_vm4, %v806_v22, %v808_v38 }
 0x15b   : > { %v814_v34 = vadd.f32 %v810_v42, %v767_v0 }
 0x15d   : > { %v849_v3 = vpop.permute.xlu1 %848  ;;  %v847_v59 = vpop.permute.xlu0 %846 }
 0x15e   : > { %v854_v30 = vsel %vm264_vm5, %v847_v59, %v849_v3 }
 0x15f   : > { %v858_v19 = vadd.f32 %v854_v30, %v813_v9 }
 0x161   : > { %v853_v23 = vpop.permute.xlu1 %852  ;;  %v851_v24 = vpop.permute.xlu0 %850 }
 0x162   : > { %v855_v33 = vsel %vm264_vm5, %v851_v24, %v853_v23  ;;  %v1394_v23 = vld [vmem:[%s2345_s3] ss:$0 sm:$0xff] }
 0x163   : > { %v859_v12 = vadd.f32 %v855_v33, %v814_v34 }
 0x165   : > { %v894_v27 = vpop.permute.xlu1 %893  ;;  %v892_v28 = vpop.permute.xlu0 %891 }
 0x166   : > { %v899_v36 = vsel %vm296_vm6, %v892_v28, %v894_v27 }
 0x167   : > { %v903_v35 = vadd.f32 %v899_v36, %v858_v19 }
 0x169   : > { %v898_v31 = vpop.permute.xlu1 %897  ;;  %v896_v11 = vpop.permute.xlu0 %895 }
 0x16a   : > { %v900_v46 = vsel %vm296_vm6, %v896_v11, %v898_v31 }
 0x16b   : > { %v904_v53 = vadd.f32 %v900_v46, %v859_v12 }
 0x16d   : > { %v939_v20 = vpop.permute.xlu1 %938  ;;  %v937_v40 = vpop.permute.xlu0 %936 }
 0x16e   : > { %v944_v47 = vsel %vm328_vm7, %v937_v40, %v939_v20 }
 0x16f   : > { %v948_v52 = vadd.f32 %v944_v47, %v903_v35 }
 0x171   : > { %v943_v54 = vpop.permute.xlu1 %942  ;;  %v941_v55 = vpop.permute.xlu0 %940  ;;  %v971_v56 = vadd.f32 %v2040_v45, %v948_v52 }
 0x172   : > { %v945_v57 = vsel %vm328_vm7, %v941_v55, %v943_v54 }
 0x173   : > { %v949_v58 = vadd.f32 %v945_v57, %v904_v53 }
 0x175   : > { %v1009_v44 = vpop.permute.xlu1 %1008  ;;  %v1007_v18 = vpop.permute.xlu0 %1006  ;;  %v972_v49 = vadd.f32 %v2066_v62, %v949_v58 }
 0x176   : > { %v1014_v13 = vsel %vm232_vm4, %v1007_v18, %v1009_v44 }
 0x177   : > { %v1018_v45 = vadd.f32 %v1014_v13, %v971_v56 }
 0x179   : > { %v1013_v43 = vpop.permute.xlu1 %1012  ;;  %v1011_v48 = vpop.permute.xlu0 %1010 }
 0x17a   : > { %v1015_v4 = vsel %vm232_vm4, %v1011_v48, %v1013_v43 }
 0x17b   : > { %v1019_v25 = vadd.f32 %v1015_v4, %v972_v49 }
 0x17d   : > { %v1054_v51 = vpop.permute.xlu1 %1053  ;;  %v1052_v50 = vpop.permute.xlu0 %1051 }
 0x17e   : > { %v1059_v61 = vsel %vm264_vm5, %v1052_v50, %v1054_v51 }
 0x17f   : > { %v1063_v62 = vadd.f32 %v1059_v61, %v1018_v45 }
 0x181   : > { %v1058_v39 = vpop.permute.xlu1 %1057  ;;  %v1056_v32 = vpop.permute.xlu0 %1055 }
 0x182   : > { %v1060_v41 = vsel %vm264_vm5, %v1056_v32, %v1058_v39 }
 0x183   : > { %v1064_v21 = vadd.f32 %v1060_v41, %v1019_v25 }
 0x185   : > { %v1099_v60 = vpop.permute.xlu1 %1098  ;;  %v1097_v1 = vpop.permute.xlu0 %1096 }
 0x186   : > { %v1104_v5 = vsel %vm296_vm6, %v1097_v1, %v1099_v60 }
 0x187   : > { %v1108_v7 = vadd.f32 %v1104_v5, %v1063_v62 }
 0x189   : > { %v1103_v63 = vpop.permute.xlu1 %1102  ;;  %v1101_v2 = vpop.permute.xlu0 %1100 }
 0x18a   : > { %v1105_v8 = vsel %vm296_vm6, %v1101_v2, %v1103_v63 }
 0x18b   : > { %v1109_v14 = vadd.f32 %v1105_v8, %v1064_v21 }
 0x18d   : > { %v1144_v6 = vpop.permute.xlu1 %1143  ;;  %v1142_v26 = vpop.permute.xlu0 %1141 }
 0x18e   : > { %v1149_v10 = vsel %vm328_vm7, %v1142_v26, %v1144_v6 }
 0x18f   : > { %v1153_v37 = vadd.f32 %v1149_v10, %v1108_v7 }
 0x191   : > { %v1148_v15 = vpop.permute.xlu1 %1147  ;;  %v1146_v16 = vpop.permute.xlu0 %1145  ;;  %1451 = vmatprep.mubr.f32.mxu0 %v1153_v37 }
 0x192   : > { %v1150_v17 = vsel %vm328_vm7, %v1146_v16, %v1148_v15 }
 0x193   : > { %v1154_v0 = vadd.f32 %v1150_v17, %v1109_v14 }
 0x195   : > { %1452 = vmatmul.mubr.f32.vlgmr.msra.gmra.mrb[0].mxu0 %v1154_v0  ;;  %v1272_v38 = vpop.permute.xlu1 %1271  ;;  %v1270_v22 = vpop.permute.xlu0 %1269 }
 0x196   : > { %v1277_v9 = vsel %vm264_vm5, %v1270_v22, %v1272_v38 }
 0x199   : > { %v1276_v3 = vpop.permute.xlu1 %1275  ;;  %v1274_v59 = vpop.permute.xlu0 %1273 }
 0x19a   : > { %v1278_v27 = vsel %vm264_vm5, %v1274_v59, %v1276_v3 }
 0x268   : > { %v1453_v24 = vpop.f32.mrb[0].mxu0 }
 0x269   : > { %v1250_v28 = vadd.f32 %v1453_v24, %v1394_v23  ;;  %v1244_v29 = vpop.f32.mrb[1].mxu0 }
 0x26a   : > { %v1245_v30 = vadd.f32 %v1394_v23, %v1244_v29 }
 0x26b   : > { %v1282_v31 = vadd.f32 %v1278_v27, %v1250_v28 }
 0x26c   : > { %v1281_v11 = vadd.f32 %v1277_v9, %v1245_v30 }
 0x26d   : > { %v1284_v42 = vmax.f32 %v1282_v31, 0.0 }
 0x26e   : > { %v1283_v36 = vmax.f32 %v1281_v11, 0.0 }
 0x26f   : > { %1286 = vst [vmem:[%s190_s30 + $0x8] sm:$0xff] %v1284_v42 }
 0x270   : > { %1285 = vst [vmem:[%s190_s30] sm:$0xff] %v1283_v36 }
 0x271   : > { %1549 = shalt.err (!%p1546_p3)
}
 0x272   : > { %s1550_s12 = scalar_lea.hbm %s2298_s13, 256  ;;  %s1554_s9 = scalar_lea.hbm %s2346_s4, 512 }
 0x273   : > { %p1551_p4 = scmp.ne.s32.totalorder %s2298_s13, %s1550_s12  ;;  %p1555_p9 = scmp.lt.u32.totalorder %s2298_s13, %s2346_s4 }
 0x274   : > { %p1556_p10 = scmp.lt.u32.totalorder %s1554_s9, %s1550_s12  ;;  %p1558_p12 = scmp.lt.u32.totalorder %s1550_s12, %s2298_s13 }
 0x275   : > { %p1552_p7 = pnand %p1551_p4, %p1673_p5 }
 0x276   : > { %p1557_p11 = por %p1556_p10, %p1555_p9 }
 0x277   : > { %p1553_p8 = pneg %p1552_p7 }
 0x278   : > { %p1559_p13 = por %p1558_p12, %p1557_p11 }
 0x27a   : > { %p1560_p0 = pnand %p1559_p13, %p1553_p8 }
 0x27c   : > { %1563 = shalt.err (!%p1560_p0)
}
 0x27d   : > { %s1609_s30 = smov 128  }
 0x27e   : > { %1487 = dma.vmem_to_hbm [thread:$0]  (%p1673_p5), %s2293_s5, 256, %s2298_s13, %s2300_s14, %s1609_s30, %s1609_s30, %s1600_s29  }
 0x27f PF: > { %p1493_p1 = scmp.ge.s32.totalorder %s1598_s18, 2  ;;  %s1316_s8 = sand.u32 1, %s1586_s15  }
 0x280   : > { %s1317_s6 = scalar_lea.sflag [#allocation3], %s1316_s8 }
 0x281   : > { %p1490_p2 = pnand %p1493_p1, %p1677_p6 }
 0x283   : > { %1581 = dma.done.wait (!%p1490_p2), %s1317_s6, 256  }
 0x284   : > { %1583 = vsyncadd (!%p1490_p2), %s1317_s6, 4294967040  ;;  %p14_p3 = scmp.ge.s32.totalorder %s1660_s21, 4   ;;  %s2349_s15 = smov %s1590_s16 }
 0x285   : > { %s2350_s16 = smov %s1594_s17  ;;  %s2351_s17 = smov %s1671_s24 }
 0x286   : > { %s2352_s18 = smov %s1660_s21  ;;  %16 = sbr.rel (!%p14_p3) target bundleno = 3 (0x3), region = 71 }
 0x28d   :  { %1322 = vsyncpa [#allocation3], 1 }
 0x28e   :  { %1324 = vsyncpa [#allocation3 + $0x1], 1 }

</bundles_post_ra>
